<compile_context>
chip_gen: v7x
topology: tpu7x:2x2x1
jax: 0.10.0
libtpu: 0.0.40
codegen_flags: <defaults>
</compile_context>

<pallas_src>
import jax
import jax.numpy as jnp
from jax.experimental import pallas as pl
from jax.experimental.pallas import tpu as pltpu


def _layernorm(z, w, b, eps=1e-5):
    mu = jnp.mean(z, axis=-1, keepdims=True)
    var = jnp.mean((z - mu) ** 2, axis=-1, keepdims=True)
    return (z - mu) * jax.lax.rsqrt(var + eps) * w + b


# ---------------------------------------------------------------------------
# Model wrapper: one fused pallas_call, grid = (batch_blocks, layer)
# ---------------------------------------------------------------------------

def transformer_forward(x, params):
    """Forward pass of TransformerModel (eval mode) via one fused pallas_call."""
    if x.ndim == 2:                       # x.unsqueeze(1) in the PyTorch code
        x = x[:, None, :]
    x = x.astype(jnp.float32)
    B, S, in_dim = x.shape

    H = params["nhead"]
    layers = params["layers"]
    L = len(layers)
    D = params["emb_w"].shape[0]
    out_dim = params["out_w"].shape[0]
    hd = D // H
    scale = 1.0 / (hd ** 0.5)
    f32, bf16 = jnp.float32, jnp.bfloat16

    # ---- one-time parameter repack (plain JAX, outside the kernel) ----------
    emb_w = params["emb_w"].T.astype(bf16)                       # (in, D)
    emb_b = params["emb_b"].reshape(1, D).astype(f32)
    out_w = params["out_w"].T.astype(bf16)                       # (D, out)
    out_b = params["out_b"].reshape(1, out_dim).astype(f32)

    def fused_qkv_w(lp):          # fold 1/sqrt(hd) into the q rows, transpose
        w = lp["wqkv"]
        return jnp.concatenate([w[:D] * scale, w[D:]], axis=0).T   # (D, 3D)

    def fused_qkv_b(lp):
        b = lp["bqkv"]
        return jnp.concatenate([b[:D] * scale, b[D:]]).reshape(1, 3 * D)

    wqkv = jnp.stack([fused_qkv_w(lp) for lp in layers]).astype(bf16)   # (L, D, 3D)
    bqkv = jnp.stack([fused_qkv_b(lp) for lp in layers]).astype(f32)    # (L, 1, 3D)
    wo = jnp.stack([lp["wo"].T for lp in layers]).astype(bf16)          # (L, D, D)
    w1 = jnp.stack([lp["w1"].T for lp in layers]).astype(bf16)          # (L, D, 4D)
    b1 = jnp.stack([lp["b1"].reshape(1, 4 * D) for lp in layers]).astype(f32)
    w2 = jnp.stack([lp["w2"].T for lp in layers]).astype(bf16)          # (L, 4D, D)
    # packed small per-layer vectors: [bo, ln1w, ln1b, b2, ln2w, ln2b]
    pvec = jnp.stack([jnp.stack([lp["bo"], lp["ln1w"], lp["ln1b"],
                                 lp["b2"], lp["ln2w"], lp["ln2b"]])
                      for lp in layers]).astype(f32)                    # (L, 6, D)

    # ---- token batching: bt sequences per grid step --------------------------
    bt = max(1, min(B, 256 // max(S, 1)))        # target ~256 matmul rows / step
    nb = -(-B // bt)
    B_pad = nb * bt
    if B_pad != B:
        x = jnp.concatenate([x, jnp.zeros((B_pad - B, S, in_dim), f32)], axis=0)
    rows = bt * S

    # ---- VMEM budget ----------------------------------------------------------
    per_layer_bytes = sum(int(a.size) * a.dtype.itemsize
                          for a in (wqkv, bqkv, wo, w1, b1, w2, pvec)) // L
    shared_bytes = sum(int(a.size) * a.dtype.itemsize
                       for a in (emb_w, emb_b, out_w, out_b))
    vmem_need = 3 * per_layer_bytes + 2 * shared_bytes + 8 * rows * D * 4 + (2 << 20)
    vmem_limit = int(min(max(vmem_need, 16 << 20), 60 << 20))

    # ---- fused kernel ---------------------------------------------------------
    def kernel(x_ref, embw_ref, embb_ref, wqkv_ref, bqkv_ref, wo_ref,
               w1_ref, b1_ref, w2_ref, pvec_ref, outw_ref, outb_ref,
               o_ref, h_ref):
        l = pl.program_id(1)
        n_layers = pl.num_programs(1)
        bt_, S_, in_dim_ = x_ref.shape
        rows_, D_ = h_ref.shape
        hd_ = D_ // H

        # ---- input embedding (first layer step only) -------------------------
        @pl.when(l == 0)
        def _():
            x2d = x_ref[...].reshape(rows_, in_dim_).astype(jnp.bfloat16)
            h_ref[...] = (jnp.dot(x2d, embw_ref[...],
                                  preferred_element_type=jnp.float32)
                          + embb_ref[...])
            # pos_encoder is nn.Dropout -> identity in eval mode.

        h = h_ref[...]                                  # (rows, D) f32
        h_bf = h.astype(jnp.bfloat16)

        # ---- fused QKV projection: one lane-dense (rows, D) @ (D, 3D) --------
        qkv = (jnp.dot(h_bf, wqkv_ref[0], preferred_element_type=jnp.float32)
               + bqkv_ref[0])                           # (rows, 3D) f32

        # ---- per-head attention, batched over the bt sequences ---------------
        # (scores are intrinsically (S,S) per head; heads split only here)
        ctx_heads = []
        for hh in range(H):
            qh = qkv[:, hh * hd_:(hh + 1) * hd_].reshape(bt_, S_, hd_).astype(jnp.bfloat16)
            kh = qkv[:, D_ + hh * hd_:D_ + (hh + 1) * hd_].reshape(bt_, S_, hd_).astype(jnp.bfloat16)
            vh = qkv[:, 2 * D_ + hh * hd_:2 * D_ + (hh + 1) * hd_].reshape(bt_, S_, hd_).astype(jnp.bfloat16)
            s = jnp.einsum("bqe,bke->bqk", qh, kh,
                           preferred_element_type=jnp.float32)        # (bt, S, S)
            s = s - jnp.max(s, axis=-1, keepdims=True)
            p = jnp.exp(s)
            p = p * pl.reciprocal(jnp.sum(p, axis=-1, keepdims=True), approx=True)
            ctx_heads.append(jnp.einsum("bqk,bke->bqe", p.astype(jnp.bfloat16), vh,
                                        preferred_element_type=jnp.float32))
        ctx = jnp.concatenate(ctx_heads, axis=-1)       # (bt, S, D) = concat(heads)
        ctx2d = ctx.reshape(rows_, D_).astype(jnp.bfloat16)

        pv = pvec_ref[0]                                # (6, D) f32
        bo, ln1w, ln1b = pv[0:1], pv[1:2], pv[2:3]
        b2, ln2w, ln2b = pv[3:4], pv[4:5], pv[5:6]

        # single output projection over the full (head, hd) = D contraction
        attn = jnp.dot(ctx2d, wo_ref[0], preferred_element_type=jnp.float32) + bo

        # ---- add & norm 1 (f32) ----------------------------------------------
        x1 = _layernorm(h + attn, ln1w, ln1b)

        # ---- feed forward (relu) ----------------------------------------------
        hmid = jnp.maximum(
            jnp.dot(x1.astype(jnp.bfloat16), w1_ref[0],
                    preferred_element_type=jnp.float32) + b1_ref[0], 0.0)
        ffn = jnp.dot(hmid.astype(jnp.bfloat16), w2_ref[0],
                      preferred_element_type=jnp.float32) + b2

        # ---- add & norm 2 (f32) ------------------------------------------------
        h_new = _layernorm(x1 + ffn, ln2w, ln2b)
        h_ref[...] = h_new

        # ---- output head (last layer step only) --------------------------------
        @pl.when(l == n_layers - 1)
        def _():
            last = h_new.reshape(bt_, S_, D_)[:, S_ - 1, :].astype(jnp.bfloat16)
            o_ref[...] = (jnp.dot(last, outw_ref[...],
                                  preferred_element_type=jnp.float32)
                          + outb_ref[...])[:, None, :]

    def per_layer(arr):
        blk = (1,) + tuple(arr.shape[1:])
        nz = (0,) * (arr.ndim - 1)
        return pl.BlockSpec(blk, lambda b, l, nz=nz: (l,) + nz)

    def shared(arr):
        blk = tuple(arr.shape)
        nz = (0,) * arr.ndim
        return pl.BlockSpec(blk, lambda b, l, nz=nz: nz)

    out = pl.pallas_call(
        kernel,
        out_shape=jax.ShapeDtypeStruct((B_pad, 1, out_dim), jnp.float32),
        grid=(nb, L),
        in_specs=[
            pl.BlockSpec((bt, S, in_dim), lambda b, l: (b, 0, 0)),   # x
            shared(emb_w), shared(emb_b),
            per_layer(wqkv), per_layer(bqkv), per_layer(wo),
            per_layer(w1), per_layer(b1), per_layer(w2), per_layer(pvec),
            shared(out_w), shared(out_b),
        ],
        out_specs=pl.BlockSpec((bt, 1, out_dim), lambda b, l: (b, 0, 0)),
        scratch_shapes=[pltpu.VMEM((rows, D), jnp.float32)],
        compiler_params=pltpu.CompilerParams(
            dimension_semantics=("parallel", "arbitrary"),
            vmem_limit_bytes=vmem_limit),
    )(x, emb_w, emb_b, wqkv, bqkv, wo, w1, b1, w2, pvec, out_w, out_b)

    return out.reshape(B_pad, out_dim)[:B]


# ---------------------------------------------------------------------------
# Deterministic parameter init + pure-JAX f32 reference check
# ---------------------------------------------------------------------------

def init_params(key, input_dim, hidden_dim, num_layers, output_dim, nhead):
    def nrm(k, shape, s=0.05):
        return (s * jax.random.normal(k, shape)).astype(jnp.float32)

    keys = jax.random.split(key, 4 + num_layers)
    params = {
        "nhead": nhead,
        "emb_w": nrm(keys[0], (hidden_dim, input_dim)),
        "emb_b": nrm(keys[1], (hidden_dim,)),
        "out_w": nrm(keys[2], (output_dim, hidden_dim)),
        "out_b": nrm(keys[3], (output_dim,)),
        "layers": [],
    }
    for l in range(num_layers):
        ks = jax.random.split(keys[4 + l], 8)
        D = hidden_dim
        params["layers"].append({
            "wqkv": nrm(ks[0], (3 * D, D)),
            "bqkv": nrm(ks[1], (3 * D,)),
            "wo":   nrm(ks[2], (D, D)),
            "bo":   nrm(ks[3], (D,)),
            "ln1w": jnp.ones((D,), jnp.float32),
            "ln1b": jnp.zeros((D,), jnp.float32),
            "w1":   nrm(ks[4], (4 * D, D)),
            "b1":   nrm(ks[5], (4 * D,)),
            "w2":   nrm(ks[6], (D, 4 * D)),
            "b2":   nrm(ks[7], (D,)),
            "ln2w": jnp.ones((D,), jnp.float32),
            "ln2b": jnp.zeros((D,), jnp.float32),
        })
    return params


def reference_forward(x, params):
    """Pure-JAX f32 reference mirroring PyTorch eval-mode semantics."""
    if x.ndim == 2:
        x = x[:, None, :]
    h = x @ params["emb_w"].T + params["emb_b"]
    nhead = params["nhead"]
    for lp in params["layers"]:
        B, S, D = h.shape
        hd = D // nhead
        qkv = h @ lp["wqkv"].T + lp["bqkv"]
        q, k, v = qkv[..., :D], qkv[..., D:2 * D], qkv[..., 2 * D:]
        q = q.reshape(B, S, nhead, hd).transpose(0, 2, 1, 3) / (hd ** 0.5)
        k = k.reshape(B, S, nhead, hd).transpose(0, 2, 1, 3)
        v = v.reshape(B, S, nhead, hd).transpose(0, 2, 1, 3)
        p = jax.nn.softmax(q @ k.transpose(0, 1, 3, 2), axis=-1)
        a = (p @ v).transpose(0, 2, 1, 3).reshape(B, S, D)
        a = a @ lp["wo"].T + lp["bo"]
        x1 = _layernorm(h + a, lp["ln1w"], lp["ln1b"])
        ff = jnp.maximum(x1 @ lp["w1"].T + lp["b1"], 0.0) @ lp["w2"].T + lp["b2"]
        h = _layernorm(x1 + ff, lp["ln2w"], lp["ln2b"])
    return h[:, -1, :] @ params["out_w"].T + params["out_b"]


if __name__ == "__main__":
    B, S = 2, 8
    input_dim, hidden_dim, num_layers, output_dim, nhead = 4, 32, 2, 4, 4

    key = jax.random.PRNGKey(0)
    kx, kp = jax.random.split(key)
    x = jax.random.normal(kx, (B, S, input_dim), dtype=jnp.float32)
    params = init_params(kp, input_dim, hidden_dim, num_layers, output_dim, nhead)

    out = transformer_forward(x, params)
    out = jax.block_until_ready(out)
    assert out.shape == (B, output_dim)

    ref = jax.block_until_ready(reference_forward(x, params))
    # bf16 matmuls + approx reciprocal in the kernel vs f32 reference.
    assert jnp.allclose(out, ref, rtol=2e-2, atol=2e-2), "mismatch vs reference"

    print("KERNEL_OK")
</pallas_src>

<mosaic_0001>
module attributes {stable_mosaic.version = 11 : i64} {
  func.func @kernel(%arg0: i32, %arg1: i32, %arg2: memref<2x8x4xf32, #tpu.memory_space<vmem>>, %arg3: memref<4x32xbf16, #tpu.memory_space<vmem>>, %arg4: memref<1x32xf32, #tpu.memory_space<vmem>>, %arg5: memref<1x32x96xbf16, #tpu.memory_space<vmem>>, %arg6: memref<1x1x96xf32, #tpu.memory_space<vmem>>, %arg7: memref<1x32x32xbf16, #tpu.memory_space<vmem>>, %arg8: memref<1x32x128xbf16, #tpu.memory_space<vmem>>, %arg9: memref<1x1x128xf32, #tpu.memory_space<vmem>>, %arg10: memref<1x128x32xbf16, #tpu.memory_space<vmem>>, %arg11: memref<1x6x32xf32, #tpu.memory_space<vmem>>, %arg12: memref<32x4xbf16, #tpu.memory_space<vmem>>, %arg13: memref<1x4xf32, #tpu.memory_space<vmem>>, %arg14: memref<2x1x4xf32, #tpu.memory_space<vmem>>, %arg15: memref<16x32xf32, #tpu.memory_space<vmem>>) attributes {dimension_semantics = [#tpu.dimension_semantics<parallel>, #tpu.dimension_semantics<arbitrary>], iteration_bounds = array<i64: 1, 2>, scalar_prefetch = 0 : i64, scratch_operands = 1 : i64, tpu.core_type = #tpu.core_type<tc>, window_params = [{transform_indices = @transform_0, window_bounds = array<i64: 2, 8, 4>}, {pipeline_mode = #tpu.pipeline_mode<synchronous>, transform_indices = @transform_1, window_bounds = array<i64: 4, 32>}, {pipeline_mode = #tpu.pipeline_mode<synchronous>, transform_indices = @transform_2, window_bounds = array<i64: 1, 32>}, {transform_indices = @transform_3, window_bounds = array<i64: 1, 32, 96>}, {transform_indices = @transform_4, window_bounds = array<i64: 1, 1, 96>}, {transform_indices = @transform_5, window_bounds = array<i64: 1, 32, 32>}, {transform_indices = @transform_6, window_bounds = array<i64: 1, 32, 128>}, {transform_indices = @transform_7, window_bounds = array<i64: 1, 1, 128>}, {transform_indices = @transform_8, window_bounds = array<i64: 1, 128, 32>}, {transform_indices = @transform_9, window_bounds = array<i64: 1, 6, 32>}, {pipeline_mode = #tpu.pipeline_mode<synchronous>, transform_indices = @transform_10, window_bounds = array<i64: 32, 4>}, {pipeline_mode = #tpu.pipeline_mode<synchronous>, transform_indices = @transform_11, window_bounds = array<i64: 1, 4>}, {transform_indices = @transform_12, window_bounds = array<i64: 2, 1, 4>}]} {
    %c0_i32 = arith.constant 0 : i32
    %0 = arith.cmpi eq, %arg1, %c0_i32 : i32
    %1 = arith.extui %0 : i1 to i32
    %c0_i32_0 = arith.constant 0 : i32
    %2 = arith.cmpi ne, %1, %c0_i32_0 : i32
    scf.if %2 {
      %c0_56 = arith.constant 0 : index
      %c0_57 = arith.constant 0 : index
      %c0_58 = arith.constant 0 : index
      %182 = vector.load %arg2[%c0_56, %c0_57, %c0_58] : memref<2x8x4xf32, #tpu.memory_space<vmem>>, vector<2x8x4xf32>
      %183 = vector.shape_cast %182 : vector<2x8x4xf32> to vector<16x4xf32>
      %184 = arith.truncf %183 : vector<16x4xf32> to vector<16x4xbf16>
      %c0_59 = arith.constant 0 : index
      %c0_60 = arith.constant 0 : index
      %185 = vector.load %arg3[%c0_59, %c0_60] : memref<4x32xbf16, #tpu.memory_space<vmem>>, vector<4x32xbf16>
      %cst_61 = arith.constant dense<0.000000e+00> : vector<16x32xf32>
      %186 = tpu.matmul %184, %185, %cst_61 {dimension_numbers = #tpu.dot_dimension_numbers<[1], [0], [0], [1], [0, 0, 1, 1], [], []>} : vector<16x4xbf16>, vector<4x32xbf16>, vector<16x32xf32> -> vector<16x32xf32>
      %c0_62 = arith.constant 0 : index
      %c0_63 = arith.constant 0 : index
      %187 = vector.load %arg4[%c0_62, %c0_63] : memref<1x32xf32, #tpu.memory_space<vmem>>, vector<1x32xf32>
      %188 = vector.broadcast %187 : vector<1x32xf32> to vector<16x32xf32>
      %189 = arith.addf %186, %188 : vector<16x32xf32>
      %c0_64 = arith.constant 0 : index
      %c0_65 = arith.constant 0 : index
      %190 = vector.load %arg15[%c0_64, %c0_65] : memref<16x32xf32, #tpu.memory_space<vmem>>, vector<16x32xf32>
      tpu.vector_store %arg15[%c0_64, %c0_65], %189 {strides = array<i32>} : memref<16x32xf32, #tpu.memory_space<vmem>>, vector<16x32xf32>,
    } else {
    }
    %c0 = arith.constant 0 : index
    %c0_1 = arith.constant 0 : index
    %3 = vector.load %arg15[%c0, %c0_1] : memref<16x32xf32, #tpu.memory_space<vmem>>, vector<16x32xf32>
    %4 = arith.truncf %3 : vector<16x32xf32> to vector<16x32xbf16>
    %c0_2 = arith.constant 0 : index
    %c0_3 = arith.constant 0 : index
    %c0_4 = arith.constant 0 : index
    %5 = vector.load %arg5[%c0_2, %c0_3, %c0_4] : memref<1x32x96xbf16, #tpu.memory_space<vmem>>, vector<1x32x96xbf16>
    %6 = vector.shape_cast %5 : vector<1x32x96xbf16> to vector<32x96xbf16>
    %cst = arith.constant dense<0.000000e+00> : vector<16x96xf32>
    %7 = tpu.matmul %4, %6, %cst {dimension_numbers = #tpu.dot_dimension_numbers<[1], [0], [0], [1], [0, 0, 1, 1], [], []>} : vector<16x32xbf16>, vector<32x96xbf16>, vector<16x96xf32> -> vector<16x96xf32>
    %c0_5 = arith.constant 0 : index
    %c0_6 = arith.constant 0 : index
    %c0_7 = arith.constant 0 : index
    %8 = vector.load %arg6[%c0_5, %c0_6, %c0_7] : memref<1x1x96xf32, #tpu.memory_space<vmem>>, vector<1x1x96xf32>
    %9 = vector.shape_cast %8 : vector<1x1x96xf32> to vector<1x96xf32>
    %10 = vector.broadcast %9 : vector<1x96xf32> to vector<16x96xf32>
    %11 = arith.addf %7, %10 : vector<16x96xf32>
    %12 = vector.extract_strided_slice %11 {offsets = [0, 0], sizes = [16, 8], strides = [1, 1]} : vector<16x96xf32> to vector<16x8xf32>
    %13 = vector.shape_cast %12 : vector<16x8xf32> to vector<2x8x8xf32>
    %14 = arith.truncf %13 : vector<2x8x8xf32> to vector<2x8x8xbf16>
    %15 = vector.extract_strided_slice %11 {offsets = [0, 32], sizes = [16, 8], strides = [1, 1]} : vector<16x96xf32> to vector<16x8xf32>
    %16 = vector.shape_cast %15 : vector<16x8xf32> to vector<2x8x8xf32>
    %17 = arith.truncf %16 : vector<2x8x8xf32> to vector<2x8x8xbf16>
    %18 = vector.extract_strided_slice %11 {offsets = [0, 64], sizes = [16, 8], strides = [1, 1]} : vector<16x96xf32> to vector<16x8xf32>
    %19 = vector.shape_cast %18 : vector<16x8xf32> to vector<2x8x8xf32>
    %20 = arith.truncf %19 : vector<2x8x8xf32> to vector<2x8x8xbf16>
    "tpu.trace_start"() <{level = 10 : i32, message = "bqe,bke->bqk"}> : () -> ()
    %cst_8 = arith.constant dense<0.000000e+00> : vector<2x8x8xf32>
    %21 = tpu.matmul %14, %17, %cst_8 {dimension_numbers = #tpu.dot_dimension_numbers<[2], [2], [1], [1], [0, 0, 0, 1, 1, 1], [0], [0]>} : vector<2x8x8xbf16>, vector<2x8x8xbf16>, vector<2x8x8xf32> -> vector<2x8x8xf32>
    "tpu.trace_stop"() : () -> ()
    %cst_9 = arith.constant dense<0xFF800000> : vector<2x8xf32>
    %22 = vector.multi_reduction <maximumf>, %21, %cst_9 [2] : vector<2x8x8xf32> to vector<2x8xf32>
    %23 = vector.shape_cast %22 : vector<2x8xf32> to vector<2x8x1xf32>
    %24 = vector.broadcast %23 : vector<2x8x1xf32> to vector<2x8x8xf32>
    %25 = arith.subf %21, %24 : vector<2x8x8xf32>
    %26 = math.exp %25 : vector<2x8x8xf32>
    %cst_10 = arith.constant dense<0.000000e+00> : vector<2x8xf32>
    %27 = vector.multi_reduction <add>, %26, %cst_10 [2] : vector<2x8x8xf32> to vector<2x8xf32>
    %28 = vector.shape_cast %27 : vector<2x8xf32> to vector<2x8x1xf32>
    %29 = tpu.reciprocal %28 {approx = true} : vector<2x8x1xf32> -> vector<2x8x1xf32>
    %30 = vector.broadcast %29 : vector<2x8x1xf32> to vector<2x8x8xf32>
    %31 = arith.mulf %26, %30 : vector<2x8x8xf32>
    %32 = arith.truncf %31 : vector<2x8x8xf32> to vector<2x8x8xbf16>
    "tpu.trace_start"() <{level = 10 : i32, message = "bqk,bke->bqe"}> : () -> ()
    %cst_11 = arith.constant dense<0.000000e+00> : vector<2x8x8xf32>
    %33 = tpu.matmul %32, %20, %cst_11 {dimension_numbers = #tpu.dot_dimension_numbers<[2], [1], [1], [2], [0, 0, 0, 1, 1, 2], [0], [0]>} : vector<2x8x8xbf16>, vector<2x8x8xbf16>, vector<2x8x8xf32> -> vector<2x8x8xf32>
    "tpu.trace_stop"() : () -> ()
    %34 = vector.extract_strided_slice %11 {offsets = [0, 8], sizes = [16, 8], strides = [1, 1]} : vector<16x96xf32> to vector<16x8xf32>
    %35 = vector.shape_cast %34 : vector<16x8xf32> to vector<2x8x8xf32>
    %36 = arith.truncf %35 : vector<2x8x8xf32> to vector<2x8x8xbf16>
    %37 = vector.extract_strided_slice %11 {offsets = [0, 40], sizes = [16, 8], strides = [1, 1]} : vector<16x96xf32> to vector<16x8xf32>
    %38 = vector.shape_cast %37 : vector<16x8xf32> to vector<2x8x8xf32>
    %39 = arith.truncf %38 : vector<2x8x8xf32> to vector<2x8x8xbf16>
    %40 = vector.extract_strided_slice %11 {offsets = [0, 72], sizes = [16, 8], strides = [1, 1]} : vector<16x96xf32> to vector<16x8xf32>
    %41 = vector.shape_cast %40 : vector<16x8xf32> to vector<2x8x8xf32>
    %42 = arith.truncf %41 : vector<2x8x8xf32> to vector<2x8x8xbf16>
    "tpu.trace_start"() <{level = 10 : i32, message = "bqe,bke->bqk"}> : () -> ()
    %cst_12 = arith.constant dense<0.000000e+00> : vector<2x8x8xf32>
    %43 = tpu.matmul %36, %39, %cst_12 {dimension_numbers = #tpu.dot_dimension_numbers<[2], [2], [1], [1], [0, 0, 0, 1, 1, 1], [0], [0]>} : vector<2x8x8xbf16>, vector<2x8x8xbf16>, vector<2x8x8xf32> -> vector<2x8x8xf32>
    "tpu.trace_stop"() : () -> ()
    %cst_13 = arith.constant dense<0xFF800000> : vector<2x8xf32>
    %44 = vector.multi_reduction <maximumf>, %43, %cst_13 [2] : vector<2x8x8xf32> to vector<2x8xf32>
    %45 = vector.shape_cast %44 : vector<2x8xf32> to vector<2x8x1xf32>
    %46 = vector.broadcast %45 : vector<2x8x1xf32> to vector<2x8x8xf32>
    %47 = arith.subf %43, %46 : vector<2x8x8xf32>
    %48 = math.exp %47 : vector<2x8x8xf32>
    %cst_14 = arith.constant dense<0.000000e+00> : vector<2x8xf32>
    %49 = vector.multi_reduction <add>, %48, %cst_14 [2] : vector<2x8x8xf32> to vector<2x8xf32>
    %50 = vector.shape_cast %49 : vector<2x8xf32> to vector<2x8x1xf32>
    %51 = tpu.reciprocal %50 {approx = true} : vector<2x8x1xf32> -> vector<2x8x1xf32>
    %52 = vector.broadcast %51 : vector<2x8x1xf32> to vector<2x8x8xf32>
    %53 = arith.mulf %48, %52 : vector<2x8x8xf32>
    %54 = arith.truncf %53 : vector<2x8x8xf32> to vector<2x8x8xbf16>
    "tpu.trace_start"() <{level = 10 : i32, message = "bqk,bke->bqe"}> : () -> ()
    %cst_15 = arith.constant dense<0.000000e+00> : vector<2x8x8xf32>
    %55 = tpu.matmul %54, %42, %cst_15 {dimension_numbers = #tpu.dot_dimension_numbers<[2], [1], [1], [2], [0, 0, 0, 1, 1, 2], [0], [0]>} : vector<2x8x8xbf16>, vector<2x8x8xbf16>, vector<2x8x8xf32> -> vector<2x8x8xf32>
    "tpu.trace_stop"() : () -> ()
    %56 = vector.extract_strided_slice %11 {offsets = [0, 16], sizes = [16, 8], strides = [1, 1]} : vector<16x96xf32> to vector<16x8xf32>
    %57 = vector.shape_cast %56 : vector<16x8xf32> to vector<2x8x8xf32>
    %58 = arith.truncf %57 : vector<2x8x8xf32> to vector<2x8x8xbf16>
    %59 = vector.extract_strided_slice %11 {offsets = [0, 48], sizes = [16, 8], strides = [1, 1]} : vector<16x96xf32> to vector<16x8xf32>
    %60 = vector.shape_cast %59 : vector<16x8xf32> to vector<2x8x8xf32>
    %61 = arith.truncf %60 : vector<2x8x8xf32> to vector<2x8x8xbf16>
    %62 = vector.extract_strided_slice %11 {offsets = [0, 80], sizes = [16, 8], strides = [1, 1]} : vector<16x96xf32> to vector<16x8xf32>
    %63 = vector.shape_cast %62 : vector<16x8xf32> to vector<2x8x8xf32>
    %64 = arith.truncf %63 : vector<2x8x8xf32> to vector<2x8x8xbf16>
    "tpu.trace_start"() <{level = 10 : i32, message = "bqe,bke->bqk"}> : () -> ()
    %cst_16 = arith.constant dense<0.000000e+00> : vector<2x8x8xf32>
    %65 = tpu.matmul %58, %61, %cst_16 {dimension_numbers = #tpu.dot_dimension_numbers<[2], [2], [1], [1], [0, 0, 0, 1, 1, 1], [0], [0]>} : vector<2x8x8xbf16>, vector<2x8x8xbf16>, vector<2x8x8xf32> -> vector<2x8x8xf32>
    "tpu.trace_stop"() : () -> ()
    %cst_17 = arith.constant dense<0xFF800000> : vector<2x8xf32>
    %66 = vector.multi_reduction <maximumf>, %65, %cst_17 [2] : vector<2x8x8xf32> to vector<2x8xf32>
    %67 = vector.shape_cast %66 : vector<2x8xf32> to vector<2x8x1xf32>
    %68 = vector.broadcast %67 : vector<2x8x1xf32> to vector<2x8x8xf32>
    %69 = arith.subf %65, %68 : vector<2x8x8xf32>
    %70 = math.exp %69 : vector<2x8x8xf32>
    %cst_18 = arith.constant dense<0.000000e+00> : vector<2x8xf32>
    %71 = vector.multi_reduction <add>, %70, %cst_18 [2] : vector<2x8x8xf32> to vector<2x8xf32>
    %72 = vector.shape_cast %71 : vector<2x8xf32> to vector<2x8x1xf32>
    %73 = tpu.reciprocal %72 {approx = true} : vector<2x8x1xf32> -> vector<2x8x1xf32>
    %74 = vector.broadcast %73 : vector<2x8x1xf32> to vector<2x8x8xf32>
    %75 = arith.mulf %70, %74 : vector<2x8x8xf32>
    %76 = arith.truncf %75 : vector<2x8x8xf32> to vector<2x8x8xbf16>
    "tpu.trace_start"() <{level = 10 : i32, message = "bqk,bke->bqe"}> : () -> ()
    %cst_19 = arith.constant dense<0.000000e+00> : vector<2x8x8xf32>
    %77 = tpu.matmul %76, %64, %cst_19 {dimension_numbers = #tpu.dot_dimension_numbers<[2], [1], [1], [2], [0, 0, 0, 1, 1, 2], [0], [0]>} : vector<2x8x8xbf16>, vector<2x8x8xbf16>, vector<2x8x8xf32> -> vector<2x8x8xf32>
    "tpu.trace_stop"() : () -> ()
    %78 = vector.extract_strided_slice %11 {offsets = [0, 24], sizes = [16, 8], strides = [1, 1]} : vector<16x96xf32> to vector<16x8xf32>
    %79 = vector.shape_cast %78 : vector<16x8xf32> to vector<2x8x8xf32>
    %80 = arith.truncf %79 : vector<2x8x8xf32> to vector<2x8x8xbf16>
    %81 = vector.extract_strided_slice %11 {offsets = [0, 56], sizes = [16, 8], strides = [1, 1]} : vector<16x96xf32> to vector<16x8xf32>
    %82 = vector.shape_cast %81 : vector<16x8xf32> to vector<2x8x8xf32>
    %83 = arith.truncf %82 : vector<2x8x8xf32> to vector<2x8x8xbf16>
    %84 = vector.extract_strided_slice %11 {offsets = [0, 88], sizes = [16, 8], strides = [1, 1]} : vector<16x96xf32> to vector<16x8xf32>
    %85 = vector.shape_cast %84 : vector<16x8xf32> to vector<2x8x8xf32>
    %86 = arith.truncf %85 : vector<2x8x8xf32> to vector<2x8x8xbf16>
    "tpu.trace_start"() <{level = 10 : i32, message = "bqe,bke->bqk"}> : () -> ()
    %cst_20 = arith.constant dense<0.000000e+00> : vector<2x8x8xf32>
    %87 = tpu.matmul %80, %83, %cst_20 {dimension_numbers = #tpu.dot_dimension_numbers<[2], [2], [1], [1], [0, 0, 0, 1, 1, 1], [0], [0]>} : vector<2x8x8xbf16>, vector<2x8x8xbf16>, vector<2x8x8xf32> -> vector<2x8x8xf32>
    "tpu.trace_stop"() : () -> ()
    %cst_21 = arith.constant dense<0xFF800000> : vector<2x8xf32>
    %88 = vector.multi_reduction <maximumf>, %87, %cst_21 [2] : vector<2x8x8xf32> to vector<2x8xf32>
    %89 = vector.shape_cast %88 : vector<2x8xf32> to vector<2x8x1xf32>
    %90 = vector.broadcast %89 : vector<2x8x1xf32> to vector<2x8x8xf32>
    %91 = arith.subf %87, %90 : vector<2x8x8xf32>
    %92 = math.exp %91 : vector<2x8x8xf32>
    %cst_22 = arith.constant dense<0.000000e+00> : vector<2x8xf32>
    %93 = vector.multi_reduction <add>, %92, %cst_22 [2] : vector<2x8x8xf32> to vector<2x8xf32>
    %94 = vector.shape_cast %93 : vector<2x8xf32> to vector<2x8x1xf32>
    %95 = tpu.reciprocal %94 {approx = true} : vector<2x8x1xf32> -> vector<2x8x1xf32>
    %96 = vector.broadcast %95 : vector<2x8x1xf32> to vector<2x8x8xf32>
    %97 = arith.mulf %92, %96 : vector<2x8x8xf32>
    %98 = arith.truncf %97 : vector<2x8x8xf32> to vector<2x8x8xbf16>
    "tpu.trace_start"() <{level = 10 : i32, message = "bqk,bke->bqe"}> : () -> ()
    %cst_23 = arith.constant dense<0.000000e+00> : vector<2x8x8xf32>
    %99 = tpu.matmul %98, %86, %cst_23 {dimension_numbers = #tpu.dot_dimension_numbers<[2], [1], [1], [2], [0, 0, 0, 1, 1, 2], [0], [0]>} : vector<2x8x8xbf16>, vector<2x8x8xbf16>, vector<2x8x8xf32> -> vector<2x8x8xf32>
    "tpu.trace_stop"() : () -> ()
    %100 = tpu.concatenate %33, %55, %77, %99 in 2 : vector<2x8x8xf32>, vector<2x8x8xf32>, vector<2x8x8xf32>, vector<2x8x8xf32> -> vector<2x8x32xf32>
    %101 = vector.shape_cast %100 : vector<2x8x32xf32> to vector<16x32xf32>
    %102 = arith.truncf %101 : vector<16x32xf32> to vector<16x32xbf16>
    %c0_24 = arith.constant 0 : index
    %c0_25 = arith.constant 0 : index
    %c0_26 = arith.constant 0 : index
    %103 = vector.load %arg11[%c0_24, %c0_25, %c0_26] : memref<1x6x32xf32, #tpu.memory_space<vmem>>, vector<1x6x32xf32>
    %104 = vector.shape_cast %103 : vector<1x6x32xf32> to vector<6x32xf32>
    %105 = vector.extract_strided_slice %104 {offsets = [0, 0], sizes = [1, 32], strides = [1, 1]} : vector<6x32xf32> to vector<1x32xf32>
    %106 = vector.extract_strided_slice %104 {offsets = [1, 0], sizes = [1, 32], strides = [1, 1]} : vector<6x32xf32> to vector<1x32xf32>
    %107 = vector.extract_strided_slice %104 {offsets = [2, 0], sizes = [1, 32], strides = [1, 1]} : vector<6x32xf32> to vector<1x32xf32>
    %108 = vector.extract_strided_slice %104 {offsets = [3, 0], sizes = [1, 32], strides = [1, 1]} : vector<6x32xf32> to vector<1x32xf32>
    %109 = vector.extract_strided_slice %104 {offsets = [4, 0], sizes = [1, 32], strides = [1, 1]} : vector<6x32xf32> to vector<1x32xf32>
    %110 = vector.extract_strided_slice %104 {offsets = [5, 0], sizes = [1, 32], strides = [1, 1]} : vector<6x32xf32> to vector<1x32xf32>
    %c0_27 = arith.constant 0 : index
    %c0_28 = arith.constant 0 : index
    %c0_29 = arith.constant 0 : index
    %111 = vector.load %arg7[%c0_27, %c0_28, %c0_29] : memref<1x32x32xbf16, #tpu.memory_space<vmem>>, vector<1x32x32xbf16>
    %112 = vector.shape_cast %111 : vector<1x32x32xbf16> to vector<32x32xbf16>
    %cst_30 = arith.constant dense<0.000000e+00> : vector<16x32xf32>
    %113 = tpu.matmul %102, %112, %cst_30 {dimension_numbers = #tpu.dot_dimension_numbers<[1], [0], [0], [1], [0, 0, 1, 1], [], []>} : vector<16x32xbf16>, vector<32x32xbf16>, vector<16x32xf32> -> vector<16x32xf32>
    %114 = vector.broadcast %105 : vector<1x32xf32> to vector<16x32xf32>
    %115 = arith.addf %113, %114 : vector<16x32xf32>
    %116 = arith.addf %3, %115 : vector<16x32xf32>
    %cst_31 = arith.constant dense<0.000000e+00> : vector<16xf32>
    %117 = vector.multi_reduction <add>, %116, %cst_31 [1] : vector<16x32xf32> to vector<16xf32>
    %118 = vector.shape_cast %117 : vector<16xf32> to vector<16x1xf32>
    %cst_32 = arith.constant 3.200000e+01 : f32
    %119 = vector.broadcast %cst_32 : f32 to vector<16x1xf32>
    %120 = arith.divf %118, %119 : vector<16x1xf32>
    %121 = vector.broadcast %120 : vector<16x1xf32> to vector<16x32xf32>
    %122 = arith.subf %116, %121 : vector<16x32xf32>
    %123 = arith.mulf %122, %122 : vector<16x32xf32>
    %cst_33 = arith.constant dense<0.000000e+00> : vector<16xf32>
    %124 = vector.multi_reduction <add>, %123, %cst_33 [1] : vector<16x32xf32> to vector<16xf32>
    %125 = vector.shape_cast %124 : vector<16xf32> to vector<16x1xf32>
    %cst_34 = arith.constant 3.200000e+01 : f32
    %126 = vector.broadcast %cst_34 : f32 to vector<16x1xf32>
    %127 = arith.divf %125, %126 : vector<16x1xf32>
    %128 = vector.broadcast %120 : vector<16x1xf32> to vector<16x32xf32>
    %129 = arith.subf %116, %128 : vector<16x32xf32>
    %cst_35 = arith.constant 9.99999974E-6 : f32
    %130 = vector.broadcast %cst_35 : f32 to vector<16x1xf32>
    %131 = arith.addf %127, %130 : vector<16x1xf32>
    %132 = math.rsqrt %131 : vector<16x1xf32>
    %133 = vector.broadcast %132 : vector<16x1xf32> to vector<16x32xf32>
    %134 = arith.mulf %129, %133 : vector<16x32xf32>
    %135 = vector.broadcast %106 : vector<1x32xf32> to vector<16x32xf32>
    %136 = arith.mulf %134, %135 : vector<16x32xf32>
    %137 = vector.broadcast %107 : vector<1x32xf32> to vector<16x32xf32>
    %138 = arith.addf %136, %137 : vector<16x32xf32>
    %139 = arith.truncf %138 : vector<16x32xf32> to vector<16x32xbf16>
    %c0_36 = arith.constant 0 : index
    %c0_37 = arith.constant 0 : index
    %c0_38 = arith.constant 0 : index
    %140 = vector.load %arg8[%c0_36, %c0_37, %c0_38] : memref<1x32x128xbf16, #tpu.memory_space<vmem>>, vector<1x32x128xbf16>
    %141 = vector.shape_cast %140 : vector<1x32x128xbf16> to vector<32x128xbf16>
    %cst_39 = arith.constant dense<0.000000e+00> : vector<16x128xf32>
    %142 = tpu.matmul %139, %141, %cst_39 {dimension_numbers = #tpu.dot_dimension_numbers<[1], [0], [0], [1], [0, 0, 1, 1], [], []>} : vector<16x32xbf16>, vector<32x128xbf16>, vector<16x128xf32> -> vector<16x128xf32>
    %c0_40 = arith.constant 0 : index
    %c0_41 = arith.constant 0 : index
    %c0_42 = arith.constant 0 : index
    %143 = vector.load %arg9[%c0_40, %c0_41, %c0_42] : memref<1x1x128xf32, #tpu.memory_space<vmem>>, vector<1x1x128xf32>
    %144 = vector.shape_cast %143 : vector<1x1x128xf32> to vector<1x128xf32>
    %145 = vector.broadcast %144 : vector<1x128xf32> to vector<16x128xf32>
    %146 = arith.addf %142, %145 : vector<16x128xf32>
    %cst_43 = arith.constant 0.000000e+00 : f32
    %147 = vector.broadcast %cst_43 : f32 to vector<16x128xf32>
    %148 = arith.maximumf %146, %147 : vector<16x128xf32>
    %149 = arith.truncf %148 : vector<16x128xf32> to vector<16x128xbf16>
    %c0_44 = arith.constant 0 : index
    %c0_45 = arith.constant 0 : index
    %c0_46 = arith.constant 0 : index
    %150 = vector.load %arg10[%c0_44, %c0_45, %c0_46] : memref<1x128x32xbf16, #tpu.memory_space<vmem>>, vector<1x128x32xbf16>
    %151 = vector.shape_cast %150 : vector<1x128x32xbf16> to vector<128x32xbf16>
    %cst_47 = arith.constant dense<0.000000e+00> : vector<16x32xf32>
    %152 = tpu.matmul %149, %151, %cst_47 {dimension_numbers = #tpu.dot_dimension_numbers<[1], [0], [0], [1], [0, 0, 1, 1], [], []>} : vector<16x128xbf16>, vector<128x32xbf16>, vector<16x32xf32> -> vector<16x32xf32>
    %153 = vector.broadcast %108 : vector<1x32xf32> to vector<16x32xf32>
    %154 = arith.addf %152, %153 : vector<16x32xf32>
    %155 = arith.addf %138, %154 : vector<16x32xf32>
    %cst_48 = arith.constant dense<0.000000e+00> : vector<16xf32>
    %156 = vector.multi_reduction <add>, %155, %cst_48 [1] : vector<16x32xf32> to vector<16xf32>
    %157 = vector.shape_cast %156 : vector<16xf32> to vector<16x1xf32>
    %cst_49 = arith.constant 3.200000e+01 : f32
    %158 = vector.broadcast %cst_49 : f32 to vector<16x1xf32>
    %159 = arith.divf %157, %158 : vector<16x1xf32>
    %160 = vector.broadcast %159 : vector<16x1xf32> to vector<16x32xf32>
    %161 = arith.subf %155, %160 : vector<16x32xf32>
    %162 = arith.mulf %161, %161 : vector<16x32xf32>
    %cst_50 = arith.constant dense<0.000000e+00> : vector<16xf32>
    %163 = vector.multi_reduction <add>, %162, %cst_50 [1] : vector<16x32xf32> to vector<16xf32>
    %164 = vector.shape_cast %163 : vector<16xf32> to vector<16x1xf32>
    %cst_51 = arith.constant 3.200000e+01 : f32
    %165 = vector.broadcast %cst_51 : f32 to vector<16x1xf32>
    %166 = arith.divf %164, %165 : vector<16x1xf32>
    %167 = vector.broadcast %159 : vector<16x1xf32> to vector<16x32xf32>
    %168 = arith.subf %155, %167 : vector<16x32xf32>
    %cst_52 = arith.constant 9.99999974E-6 : f32
    %169 = vector.broadcast %cst_52 : f32 to vector<16x1xf32>
    %170 = arith.addf %166, %169 : vector<16x1xf32>
    %171 = math.rsqrt %170 : vector<16x1xf32>
    %172 = vector.broadcast %171 : vector<16x1xf32> to vector<16x32xf32>
    %173 = arith.mulf %168, %172 : vector<16x32xf32>
    %174 = vector.broadcast %109 : vector<1x32xf32> to vector<16x32xf32>
    %175 = arith.mulf %173, %174 : vector<16x32xf32>
    %176 = vector.broadcast %110 : vector<1x32xf32> to vector<16x32xf32>
    %177 = arith.addf %175, %176 : vector<16x32xf32>
    %c0_53 = arith.constant 0 : index
    %c0_54 = arith.constant 0 : index
    %178 = vector.load %arg15[%c0_53, %c0_54] : memref<16x32xf32, #tpu.memory_space<vmem>>, vector<16x32xf32>
    tpu.vector_store %arg15[%c0_53, %c0_54], %177 {strides = array<i32>} : memref<16x32xf32, #tpu.memory_space<vmem>>, vector<16x32xf32>,
    %c1_i32 = arith.constant 1 : i32
    %179 = arith.cmpi eq, %arg1, %c1_i32 : i32
    %180 = arith.extui %179 : i1 to i32
    %c0_i32_55 = arith.constant 0 : i32
    %181 = arith.cmpi ne, %180, %c0_i32_55 : i32
    scf.if %181 {
      %182 = vector.shape_cast %177 : vector<16x32xf32> to vector<2x8x32xf32>
      %183 = vector.extract_strided_slice %182 {offsets = [0, 7, 0], sizes = [2, 1, 32], strides = [1, 1, 1]} : vector<2x8x32xf32> to vector<2x1x32xf32>
      %184 = vector.shape_cast %183 : vector<2x1x32xf32> to vector<2x32xf32>
      %185 = arith.truncf %184 : vector<2x32xf32> to vector<2x32xbf16>
      %c0_56 = arith.constant 0 : index
      %c0_57 = arith.constant 0 : index
      %186 = vector.load %arg12[%c0_56, %c0_57] : memref<32x4xbf16, #tpu.memory_space<vmem>>, vector<32x4xbf16>
      %cst_58 = arith.constant dense<0.000000e+00> : vector<2x4xf32>
      %187 = tpu.matmul %185, %186, %cst_58 {dimension_numbers = #tpu.dot_dimension_numbers<[1], [0], [0], [1], [0, 0, 1, 1], [], []>} : vector<2x32xbf16>, vector<32x4xbf16>, vector<2x4xf32> -> vector<2x4xf32>
      %c0_59 = arith.constant 0 : index
      %c0_60 = arith.constant 0 : index
      %188 = vector.load %arg13[%c0_59, %c0_60] : memref<1x4xf32, #tpu.memory_space<vmem>>, vector<1x4xf32>
      %189 = vector.broadcast %188 : vector<1x4xf32> to vector<2x4xf32>
      %190 = arith.addf %187, %189 : vector<2x4xf32>
      %191 = vector.shape_cast %190 : vector<2x4xf32> to vector<2x1x4xf32>
      %c0_61 = arith.constant 0 : index
      %c0_62 = arith.constant 0 : index
      %c0_63 = arith.constant 0 : index
      %192 = vector.load %arg14[%c0_61, %c0_62, %c0_63] : memref<2x1x4xf32, #tpu.memory_space<vmem>>, vector<2x1x4xf32>
      tpu.vector_store %arg14[%c0_61, %c0_62, %c0_63], %191 {strides = array<i32>} : memref<2x1x4xf32, #tpu.memory_space<vmem>>, vector<2x1x4xf32>,
    } else {
    }
    return
  }
  func.func @transform_0(%arg0: i32, %arg1: i32) -> (i32, i32, i32) {
    %c0_i32 = arith.constant 0 : i32
    %c0_i32_0 = arith.constant 0 : i32
    %c0_i32_1 = arith.constant 0 : i32
    return %arg0, %c0_i32, %c0_i32_0 : i32, i32, i32
  }
  func.func @transform_1(%arg0: i32, %arg1: i32) -> (i32, i32) {
    %c0_i32 = arith.constant 0 : i32
    %c0_i32_0 = arith.constant 0 : i32
    %c0_i32_1 = arith.constant 0 : i32
    return %c0_i32, %c0_i32_0 : i32, i32
  }
  func.func @transform_2(%arg0: i32, %arg1: i32) -> (i32, i32) {
    %c0_i32 = arith.constant 0 : i32
    %c0_i32_0 = arith.constant 0 : i32
    %c0_i32_1 = arith.constant 0 : i32
    return %c0_i32, %c0_i32_0 : i32, i32
  }
  func.func @transform_3(%arg0: i32, %arg1: i32) -> (i32, i32, i32) {
    %c0_i32 = arith.constant 0 : i32
    %c0_i32_0 = arith.constant 0 : i32
    %c0_i32_1 = arith.constant 0 : i32
    return %arg1, %c0_i32, %c0_i32_0 : i32, i32, i32
  }
  func.func @transform_4(%arg0: i32, %arg1: i32) -> (i32, i32, i32) {
    %c0_i32 = arith.constant 0 : i32
    %c0_i32_0 = arith.constant 0 : i32
    %c0_i32_1 = arith.constant 0 : i32
    return %arg1, %c0_i32, %c0_i32_0 : i32, i32, i32
  }
  func.func @transform_5(%arg0: i32, %arg1: i32) -> (i32, i32, i32) {
    %c0_i32 = arith.constant 0 : i32
    %c0_i32_0 = arith.constant 0 : i32
    %c0_i32_1 = arith.constant 0 : i32
    return %arg1, %c0_i32, %c0_i32_0 : i32, i32, i32
  }
  func.func @transform_6(%arg0: i32, %arg1: i32) -> (i32, i32, i32) {
    %c0_i32 = arith.constant 0 : i32
    %c0_i32_0 = arith.constant 0 : i32
    %c0_i32_1 = arith.constant 0 : i32
    return %arg1, %c0_i32, %c0_i32_0 : i32, i32, i32
  }
  func.func @transform_7(%arg0: i32, %arg1: i32) -> (i32, i32, i32) {
    %c0_i32 = arith.constant 0 : i32
    %c0_i32_0 = arith.constant 0 : i32
    %c0_i32_1 = arith.constant 0 : i32
    return %arg1, %c0_i32, %c0_i32_0 : i32, i32, i32
  }
  func.func @transform_8(%arg0: i32, %arg1: i32) -> (i32, i32, i32) {
    %c0_i32 = arith.constant 0 : i32
    %c0_i32_0 = arith.constant 0 : i32
    %c0_i32_1 = arith.constant 0 : i32
    return %arg1, %c0_i32, %c0_i32_0 : i32, i32, i32
  }
  func.func @transform_9(%arg0: i32, %arg1: i32) -> (i32, i32, i32) {
    %c0_i32 = arith.constant 0 : i32
    %c0_i32_0 = arith.constant 0 : i32
    %c0_i32_1 = arith.constant 0 : i32
    return %arg1, %c0_i32, %c0_i32_0 : i32, i32, i32
  }
  func.func @transform_10(%arg0: i32, %arg1: i32) -> (i32, i32) {
    %c0_i32 = arith.constant 0 : i32
    %c0_i32_0 = arith.constant 0 : i32
    %c0_i32_1 = arith.constant 0 : i32
    return %c0_i32, %c0_i32_0 : i32, i32
  }
  func.func @transform_11(%arg0: i32, %arg1: i32) -> (i32, i32) {
    %c0_i32 = arith.constant 0 : i32
    %c0_i32_0 = arith.constant 0 : i32
    %c0_i32_1 = arith.constant 0 : i32
    return %c0_i32, %c0_i32_0 : i32, i32
  }
  func.func @transform_12(%arg0: i32, %arg1: i32) -> (i32, i32, i32) {
    %c0_i32 = arith.constant 0 : i32
    %c0_i32_0 = arith.constant 0 : i32
    %c0_i32_1 = arith.constant 0 : i32
    return %arg0, %c0_i32, %c0_i32_0 : i32, i32, i32
  }
}

</mosaic_0001>

<bundles_post_ra>
// kernel: tpu_custom_call.1
= control target key start
LH: loop header
LB: loop body
LE: loop exit
PB: predicated region body
PF: predicated region fallthrough
CT: control target
= control target key end

     0   :  { %s3070_s0 = inlined_call_operand.vmem [shape: f32[2,8,4], index: 0, kind: input, shape index: {}]   ;;  %s3071_s1 = inlined_call_operand.vmem [shape: bf16[4,32], index: 1, kind: input, shape index: {}]   ;;  %s3072_s2 = inlined_call_operand.vmem [shape: f32[1,32], index: 2, kind: input, shape index: {}]   ;;  %s3073_s3 = inlined_call_operand.vmem [shape: bf16[2,32,96], index: 3, kind: input, shape index: {}]   ;;  %s3074_s4 = inlined_call_operand.vmem [shape: f32[2,1,96], index: 4, kind: input, shape index: {}]   ;;  %s3075_s5 = inlined_call_operand.vmem [shape: bf16[2,32,32], index: 5, kind: input, shape index: {}]   ;;  %s3076_s6 = inlined_call_operand.vmem [shape: bf16[2,32,128], index: 6, kind: input, shape index: {}]   ;;  %s3077_s7 = inlined_call_operand.vmem [shape: f32[2,1,128], index: 7, kind: input, shape index: {}]   ;;  %s3078_s8 = inlined_call_operand.vmem [shape: bf16[2,128,32], index: 8, kind: input, shape index: {}]   ;;  %s3079_s9 = inlined_call_operand.vmem [shape: f32[2,6,32], index: 9, kind: input, shape index: {}]   ;;  %s3080_s10 = inlined_call_operand.vmem [shape: bf16[32,4], index: 10, kind: input, shape index: {}]   ;;  %s3081_s11 = inlined_call_operand.vmem [shape: f32[1,4], index: 11, kind: input, shape index: {}]   ;;  %s3082_s12 = inlined_call_operand.hbm [shape: f32[2,1,4], index: 12, kind: output, shape index: {}]  }
   0x1   :  { %3085 = sst [smem:[#allocation8_spill]] %s3073_s3 }
   0x2   :  { %3086 = sst [smem:[#allocation9_spill]] %s3082_s12 }
   0x3   :  { %17 = vsyncpa [#allocation4], 0  ;;  %s2719_s21 = smov 0   ;;  %s2721_s22 = smov 0  }
   0x4   :  { %s2723_s23 = smov 0  }
   0x5 LB: > { %3087 = sst [smem:[#allocation6_spill]] %s2625_s22  ;;  %s32_s25 = sadd.s32 1, %s2625_s22  ;;  %s2629_s23 = sphi %s2723_s23, %s23_s23   ;;  %s2625_s22 = sphi %s2721_s22, %s3095_s22   ;;  %s2621_s21 = sphi %s2719_s21, %s3094_s21  }
   0x6   : > { %p33_p0 = scmp.ge.s32.totalorder %s32_s25, 2  ;;  %p2183_p1 = scmp.ge.s32.totalorder %s2629_s23, 1 }
   0x7   : > { %p441_p2 = scmp.lt.s32.totalorder %s2629_s23, 3 }
   0x8   : > { %s3097_s25 = smov (%p33_p0, %s32_s25), 0 }
   0x9   : > { %3088 = sst [smem:[#allocation7_spill]] %s3097_s25  ;;  %p442_p3 = pnand %p2183_p1, %p441_p2 }
   0xa   : > { %p514_p4 = scmp.lt.s32.totalorder (!%p442_p3), %s2621_s21, 1  ;;  %s3089_s3 = sld [smem:[#allocation8_spill]] (!%p442_p3) }
   0xb   : > { %445 = sbr.rel (%p442_p3) target bundleno = 4613 (0x1205), region = 68  ;;  %p2193_p5 = scmp.ne.s32.totalorder (!%p442_p3), %s2621_s21, 0 }
  0x12   : > { %s2742_s26 = scalar_select %p514_p4, %s2621_s21, 1 }
  0x13   : > { %549 = sbr.rel (%p2193_p5) target bundleno = 241 (0xf1), region = 72  ;;  %v553_v0 = vld [vmem:[%s3071_s1] sm:$0x3] (!%p2193_p5)  ;;  %vm565_vm0 = vcmask (!%p2193_p5), 1041408   ;;  %v2631_v2 = vmov (!%p2193_p5), 0.0   ;;  %vm2632_vm1 = vmmov (!%p2193_p5), 0  }
  0x14   : > { %s2240_s27 = sshll.u32 %s2742_s26, 4  ;;  %s534_s28 = scalar_lea.vmem %s3077_s7, %s2742_s26  ;;  %v550_v1 = vld [vmem:[%s3070_s0] sm:$0xff] (!%p2193_p5)  ;;  %2299 = vmatprep.subr.bf16.mxu0 (!%p2193_p5), %v2631_v2  ;;  %v567_v3 = vsel (!%p2193_p5), %vm565_vm0, %v553_v0, 0  ;;  %2301 = vmatprep.mubr.msk.bf16.mxu0 (!%p2193_p5), %vm2632_vm1, %v2631_v2  ;;  %v551_v4 = vld [vmem:[%s3070_s0 + $0x8] sm:$0xff] (!%p2193_p5)  ;;  %vm561_vm2 = vcmask (!%p2193_p5), 31744   ;;  %vm610_vm3 = vcmask (!%p2193_p5), 261120  }
  0x15   : > { %s2752_s15 = scalar_lea.vmem %s3089_s3, %s2240_s27  ;;  %s2757_s18 = scalar_lea.vmem %s3075_s5, %s2240_s27  ;;  %2300 = vmatpush3.bf16.msra.mxu0 (!%p2193_p5), %v567_v3  ;;  %v552_v5 = vpack.c.bf16 (!%p2193_p5), %v551_v4, %v550_v1  ;;  %v2194_v6 = vld [vmem:[%s3072_s2] ss:$0 sm:$0xff] (!%p2193_p5) }
  0x16   : > { %s2762_s24 = scalar_lea.vmem %s3076_s6, %s2240_s27  ;;  %s2243_s29 = sshll.u32 %s2742_s26, 6 }
  0x17   : > { %s2192_s30 = sshll.u32 %s2742_s26, 3  ;;  %s2773_s14 = scalar_lea.vmem %s3078_s8, %s2243_s29 }
  0x18   : > { %s2778_s17 = scalar_lea.vmem %s3079_s9, %s2192_s30  ;;  %2302 = vmatmul.mubr.msk.bf16.vlgmr.msra.gmra.mrb[0].mxu0 (!%p2193_p5), %vm561_vm2, %v552_v5 }
  0xeb   : > { %v603_v7 = vpop.f32.mrb[0].mxu0 }
  0xec   : > { %v604_v8 = vadd.f32 %v2194_v6, %v603_v7  ;;  %v2303_v9 = vpop.f32.mrb[1].mxu0 }
  0xed   : > { %v606_v10 = vpop.f32.mrb[2].mxu0 }
  0xee   : > { %611 = vst.msk [vmem:[#allocation2] sm:$0xff] %vm610_vm3, %v604_v8  ;;  %v607_v11 = vadd.f32 %v2194_v6, %v606_v10  ;;  %v2304_v12 = vpop.f32.mrb[3].mxu0 }
  0xf0   : > { %612 = vst.msk [vmem:[#allocation2 + $0x8] sm:$0xff] %vm610_vm3, %v607_v11 }
  0xf1 PF: > { %v2521_v13 = vld [vmem:[%s2752_s15] sm:$0xff]   ;;  %v2633_v14 = vmov 0.0   ;;  %v2522_v15 = vld [vmem:[%s2752_s15 + $0x8] sm:$0xff]   ;;  %vm2634_vm4 = vmmov 0   ;;  %vm639_vm5 = vcmask 261120   ;;  %s3090_s13 = scalar_lea.vmem %s3074_s4, %s2742_s26  ;;  %s2635_s16 = smov 96  }
  0xf2   : > { %2305 = vmatprep.subr.bf16.mxu0 %v2633_v14  ;;  %2325 = vmatprep.subr.bf16.mxu1 %v2633_v14  ;;  %v2196_v19 = vld [vmem:[%s3090_s13] ss:$0 sm:$0xff]  ;;  %vm689_vm6 = vcmask 64512   ;;  %s2636_s27 = smov 64   ;;  %s2637_s19 = smov 88   ;;  %vm814_vm7 = vcmask 1043456  }
  0xf3   : > { %2306 = vmatpush3.bf16.msra.mxu0 %v2521_v13  ;;  %2309 = vmatprep.mubr.msk.bf16.mxu0 %vm2634_vm4, %v2633_v14  ;;  %s2638_s22 = smov 120   ;;  %s2639_s25 = smov 56   ;;  %vm1592_vm8 = vcmask 130048   ;;  %vm1595_vm9 = vcmask 195584  }
  0xf4   : > { %2307 = vmatprep.subr.bf16.mxu0 %v2633_v14  ;;  %2327 = vmatprep.mubr.msk.bf16.mxu1 %vm2634_vm4, %v2633_v14  ;;  %s2640_s3 = smov 80   ;;  %s2641_s12 = smov 112  }
  0xf5   : > { %v2799_v16 = vld [vmem:[#allocation2] sm:$0xff]  ;;  %s2642_s30 = smov 48   ;;  %s2643_s20 = smov 72  }
  0xf6   : > { %s2644_s15 = smov 104   ;;  %s2645_s29 = smov 40  }
  0xf7   : > { %v2801_v17 = vld [vmem:[#allocation2 + $0x8] sm:$0xff]  ;;  %2308 = vmatpush3.bf16.msra.mxu0 %v2522_v15  ;;  %s2646_s13 = smov 8   ;;  %p2231_p6 = scmp.ne.s32.totalorder %s2621_s21, 1 }
  0xf8   : > { %v615_v18 = vpack.c.bf16 %v2801_v17, %v2799_v16  ;;  %2313 = vmatprep.subr.bf16.mxu0 %v2633_v14  ;;  %vm2650_vm10 = vmmov (!%p2231_p6), 0   ;;  %vm1950_vm11 = vcmask (!%p2231_p6), 1041409   ;;  %vm2033_vm12 = vcmask (!%p2231_p6), 24576  }
  0xfa   : > { %2310 = vmatmul.mubr.msk.bf16.vlgmr.msra.gmra.mrb[0].mxu0 %vm639_vm5, %v615_v18 }
  0xfb   : > { %2315 = vmatprep.mubr.msk.bf16.mxu0 %vm2634_vm4, %v2633_v14 }
 0x1cd   : > { %v677_v20 = vpop.f32.mrb[0].mxu0 }
 0x1ce   : > { %v678_v21 = vadd.f32 %v2196_v19, %v677_v20  ;;  %v2311_v22 = vpop.f32.mrb[1].mxu0 }
 0x1cf   : > { %v680_v23 = vpop.f32.mrb[2].mxu0 }
 0x1d0   : > { %v2817_v24 = vpack.c.bf16 %v678_v21, %v678_v21  ;;  %v681_v25 = vadd.f32 %v2196_v19, %v680_v23  ;;  %v2312_v26 = vpop.f32.mrb[3].mxu0 }
 0x1d2   : > { %687 = vrot.lane.b32.xlu0 %v2817_v24, %s2635_s16  ;;  %v2820_v27 = vpack.c.bf16 %v681_v25, %v681_v25 }
 0x1d6   : > { %737 = vrot.lane.b32.xlu0 %v2820_v27, %s2635_s16  ;;  %s2647_s16 = smov 16  }
 0x244   : > { %v688_v28 = vpop.permute.xlu0 %687 }
 0x245   : > { %v694_v29 = vsel %vm689_vm6, %v688_v28, 0 }
 0x246   : > { %2314 = vmatpush3.bf16.xpose.msra.mxu0 %v694_v29 }
 0x247   : > { %2319 = vmatprep.subr.bf16.mxu0 %v2633_v14 }
 0x248   : > { %v738_v30 = vpop.permute.xlu0 %737 }
 0x249   : > { %v743_v31 = vsel %vm689_vm6, %v738_v30, 0 }
 0x24d   : > { %2316 = vmatmul.mubr.msk.bf16.vlgmr.msra.gmra.mrb[4].mxu0 %vm689_vm6, %v2817_v24 }
 0x24e   : > { %2320 = vmatpush3.bf16.xpose.msra.mxu0 %v743_v31  ;;  %2321 = vmatprep.mubr.msk.bf16.mxu0 %vm2634_vm4, %v2633_v14 }
 0x24f   : > { %2331 = vmatprep.subr.bf16.mxu0 %v2633_v14 }
 0x255   : > { %2322 = vmatmul.mubr.msk.bf16.vlgmr.msra.gmra.mrb[8].mxu0 %vm689_vm6, %v2820_v27 }
 0x256   : > { %2333 = vmatprep.mubr.msk.bf16.mxu0 %vm2634_vm4, %v2633_v14 }
 0x320   : > { %v730_v32 = vpop.f32.mrb[4].mxu0 }
 0x321   : > { %v2317_v33 = vpop.f32.mrb[5].mxu0  ;;  %v785_v34 = vsel %vm689_vm6, %v730_v32, -inf }
 0x322   : > { %786 = vmax.xlane.f32.xlu1 %v785_v34  ;;  %v733_v35 = vpop.f32.mrb[6].mxu0 }
 0x323   : > { %v2318_v36 = vpop.f32.mrb[7].mxu0 }
 0x328   : > { %v779_v37 = vpop.f32.mrb[8].mxu0 }
 0x329   : > { %v2323_v38 = vpop.f32.mrb[9].mxu0  ;;  %v788_v39 = vsel %vm689_vm6, %v779_v37, -inf }
 0x32a   : > { %789 = vmax.xlane.f32.xlu1 %v788_v39  ;;  %v782_v40 = vpop.f32.mrb[10].mxu0 }
 0x32b   : > { %v2324_v41 = vpop.f32.mrb[11].mxu0 }
 0x33b   : > { %809 = vrot.lane.b32.xlu1 %v2817_v24, %s2636_s27 }
 0x33f   : > { %858 = vrot.lane.b32.xlu1 %v2820_v27, %s2636_s27  ;;  %s2648_s27 = smov 24  }
 0x343   : > { %908 = vrot.lane.b32.xlu1 %v2817_v24, %s2637_s19 }
 0x3af   : > { %v787_v42 = vpop.xlane.xlu1 %786 }
 0x3b0   : > { %v791_v43 = vsub.f32 %v730_v32, %v787_v42 }
 0x3b2   : > { %v793_v44 = vmul.f32 1.442695, %v791_v43 }
 0x3b4   : > { %2535 = vpow2.f32 %v793_v44 }
 0x3b7   : > { %v790_v45 = vpop.xlane.xlu1 %789 }
 0x3b8   : > { %v792_v46 = vsub.f32 %v779_v37, %v790_v45 }
 0x3ba   : > { %v795_v47 = vmul.f32 1.442695, %v792_v46 }
 0x3bb   : > { %v810_v48 = vpop.permute.xlu1 %809 }
 0x3bc   : > { %2537 = vpow2.f32 %v795_v47  ;;  %v816_v49 = vsel %vm814_vm7, %v810_v48, 0 }
 0x3bd   : > { %2326 = vmatpush3.bf16.msra.mxu1 %v816_v49 }
 0x3be   : > { %v2536_v50 = vpop.eup %2535  ;;  %2337 = vmatprep.subr.bf16.mxu1 %v2633_v14 }
 0x3bf   : > { %v859_v51 = vpop.permute.xlu1 %858  ;;  %v797_v52 = vsel %vm689_vm6, %v2536_v50, 0.0 }
 0x3c0   : > { %v864_v53 = vsel %vm814_vm7, %v859_v51, 0  ;;  %798 = vadd.xlane.f32.xlu0 %v797_v52 }
 0x3c1   : > { %2332 = vmatpush3.bf16.msra.mxu0 %v864_v53 }
 0x3c2   : > { %2343 = vmatprep.subr.bf16.mxu0 %v2633_v14 }
 0x3c3   : > { %v909_v57 = vpop.permute.xlu1 %908 }
 0x3c4   : > { %v914_v62 = vsel %vm689_vm6, %v909_v57, 0 }
 0x3c6   : > { %v2538_v54 = vpop.eup %2537 }
 0x3c7   : > { %v800_v55 = vsel %vm689_vm6, %v2538_v54, 0.0 }
 0x3c8   : > { %801 = vadd.xlane.f32.xlu1 %v800_v55 }
 0x3d6   : > { %906 = vrot.lane.b32.xlu0 %v2817_v24, %s2638_s22 }
 0x3d9   : > { %958 = vrot.lane.b32.xlu1 %v2820_v27, %s2637_s19 }
 0x3dd   : > { %956 = vrot.lane.b32.xlu1 %v2820_v27, %s2638_s22 }
 0x44d   : > { %v799_v56 = vpop.xlane.xlu0 %798 }
 0x44e   : > { %2539 = vrcp.f32 %v799_v56 }
 0x451   : > { %v907_v3 = vpop.permute.xlu0 %906 }
 0x455   : > { %v802_v58 = vpop.xlane.xlu1 %801 }
 0x456   : > { %2541 = vrcp.f32 %v802_v58 }
 0x458   : > { %v2540_v59 = vpop.eup %2539 }
 0x459   : > { %v805_v60 = vmul.f32 %v2540_v59, %v2536_v50  ;;  %v959_v1 = vpop.permute.xlu1 %958 }
 0x45a   : > { %v964_v4 = vsel %vm689_vm6, %v959_v1, 0 }
 0x45b   : > { %v807_v61 = vpack.c.bf16 %v805_v60, %v805_v60 }
 0x45d   : > { %2328 = vmatmul.mubr.msk.bf16.vlgmr.msra.gmra.mrb[0].mxu1 %vm689_vm6, %v807_v61  ;;  %v957_v5 = vpop.permute.xlu1 %956 }
 0x45e   : > { %2338 = vmatpush3.bf16.xpose.msra.mxu1 %v914_v62  ;;  %2339 = vmatprep.mubr.msk.bf16.mxu1 %vm2634_vm4, %v2633_v14 }
 0x45f   : > { %2349 = vmatprep.subr.bf16.mxu1 %v2633_v14 }
 0x460   : > { %v2542_v63 = vpop.eup %2541 }
 0x461   : > { %v806_v0 = vmul.f32 %v2542_v63, %v2538_v54 }
 0x463   : > { %v808_v2 = vpack.c.bf16 %v806_v0, %v806_v0 }
 0x465   : > { %2334 = vmatmul.mubr.msk.bf16.vlgmr.msra.gmra.mrb[12].mxu0 %vm689_vm6, %v808_v2  ;;  %2340 = vmatmul.mubr.msk.bf16.vlgmr.msra.gmra.mrb[4].mxu1 %vm689_vm6, %v907_v3 }
 0x466   : > { %2344 = vmatpush3.bf16.xpose.msra.mxu0 %v964_v4  ;;  %2345 = vmatprep.mubr.msk.bf16.mxu0 %vm2634_vm4, %v2633_v14 }
 0x467   : > { %2355 = vmatprep.subr.bf16.mxu0 %v2633_v14  ;;  %2351 = vmatprep.mubr.msk.bf16.mxu1 %vm2634_vm4, %v2633_v14 }
 0x46d   : > { %2346 = vmatmul.mubr.msk.bf16.vlgmr.msra.gmra.mrb[16].mxu0 %vm689_vm6, %v957_v5 }
 0x46e   : > { %2357 = vmatprep.mubr.msk.bf16.mxu0 %vm2634_vm4, %v2633_v14 }
 0x530   : > { %v2865_v6 = vpop.f32.mrb[0].mxu1 }
 0x531   : > { %v2329_v7 = vpop.f32.mrb[1].mxu1 }
 0x532   : > { %v855_v8 = vpop.f32.mrb[2].mxu1 }
 0x533   : > { %v2330_v9 = vpop.f32.mrb[3].mxu1 }
 0x538   : > { %v2867_v10 = vpop.f32.mrb[12].mxu0  ;;  %v950_v11 = vpop.f32.mrb[4].mxu1 }
 0x539   : > { %v2335_v12 = vpop.f32.mrb[13].mxu0  ;;  %v2341_v13 = vpop.f32.mrb[5].mxu1  ;;  %v1006_v15 = vsel %vm689_vm6, %v950_v11, -inf }
 0x53a   : > { %1007 = vmax.xlane.f32.xlu1 %v1006_v15  ;;  %v903_v18 = vpop.f32.mrb[14].mxu0  ;;  %v953_v19 = vpop.f32.mrb[6].mxu1 }
 0x53b   : > { %v2336_v20 = vpop.f32.mrb[15].mxu0  ;;  %v2342_v21 = vpop.f32.mrb[7].mxu1 }
 0x540   : > { %v1000_v22 = vpop.f32.mrb[16].mxu0 }
 0x541   : > { %v2347_v23 = vpop.f32.mrb[17].mxu0  ;;  %v1009_v25 = vsel %vm689_vm6, %v1000_v22, -inf }
 0x542   : > { %1010 = vmax.xlane.f32.xlu0 %v1009_v25  ;;  %v1003_v26 = vpop.f32.mrb[18].mxu0 }
 0x543   : > { %v2348_v28 = vpop.f32.mrb[19].mxu0 }
 0x54b   : > { %1030 = vrot.lane.b32.xlu1 %v2817_v24, %s2639_s25 }
 0x54f   : > { %1128 = vrot.lane.b32.xlu1 %v2817_v24, %s2640_s3 }
 0x558   : > { %1078 = vrot.lane.b32.xlu0 %v2820_v27, %s2639_s25 }
 0x55c   : > { %1126 = vrot.lane.b32.xlu0 %v2817_v24, %s2641_s12 }
 0x5c7   : > { %v1008_v29 = vpop.xlane.xlu1 %1007 }
 0x5c8   : > { %v1012_v30 = vsub.f32 %v950_v11, %v1008_v29 }
 0x5ca   : > { %v1014_v31 = vmul.f32 1.442695, %v1012_v30 }
 0x5cb   : > { %v1031_v32 = vpop.permute.xlu1 %1030 }
 0x5cc   : > { %2543 = vpow2.f32 %v1014_v31  ;;  %v1036_v33 = vsel %vm814_vm7, %v1031_v32, 0 }
 0x5cd   : > { %2350 = vmatpush3.bf16.msra.mxu1 %v1036_v33 }
 0x5ce   : > { %2361 = vmatprep.subr.bf16.mxu1 %v2633_v14 }
 0x5cf   : > { %v1011_v34 = vpop.xlane.xlu0 %1010  ;;  %v1129_v43 = vpop.permute.xlu1 %1128 }
 0x5d0   : > { %v1013_v35 = vsub.f32 %v1000_v22, %v1011_v34  ;;  %v1134_v49 = vsel %vm689_vm6, %v1129_v43, 0 }
 0x5d2   : > { %v1016_v36 = vmul.f32 1.442695, %v1013_v35 }
 0x5d3   : > { %v1079_v37 = vpop.permute.xlu0 %1078 }
 0x5d4   : > { %2545 = vpow2.f32 %v1016_v36  ;;  %v1084_v38 = vsel %vm814_vm7, %v1079_v37, 0 }
 0x5d5   : > { %2356 = vmatpush3.bf16.msra.mxu0 %v1084_v38 }
 0x5d6   : > { %v2544_v39 = vpop.eup %2543  ;;  %2367 = vmatprep.subr.bf16.mxu0 %v2633_v14 }
 0x5d7   : > { %v1018_v40 = vsel %vm689_vm6, %v2544_v39, 0.0  ;;  %v1127_v54 = vpop.permute.xlu0 %1126 }
 0x5d8   : > { %1019 = vadd.xlane.f32.xlu1 %v1018_v40 }
 0x5de   : > { %v2546_v41 = vpop.eup %2545 }
 0x5df   : > { %v1021_v42 = vsel %vm689_vm6, %v2546_v41, 0.0 }
 0x5e0   : > { %1022 = vadd.xlane.f32.xlu1 %v1021_v42 }
 0x5f1   : > { %1178 = vrot.lane.b32.xlu1 %v2820_v27, %s2640_s3 }
 0x5f5   : > { %1176 = vrot.lane.b32.xlu1 %v2820_v27, %s2641_s12 }
 0x665   : > { %v1020_v44 = vpop.xlane.xlu1 %1019 }
 0x666   : > { %2547 = vrcp.f32 %v1020_v44 }
 0x66d   : > { %v1023_v45 = vpop.xlane.xlu1 %1022 }
 0x66e   : > { %2549 = vrcp.f32 %v1023_v45 }
 0x670   : > { %v2548_v46 = vpop.eup %2547 }
 0x671   : > { %v1026_v47 = vmul.f32 %v2548_v46, %v2544_v39  ;;  %v1179_v52 = vpop.permute.xlu1 %1178 }
 0x672   : > { %v1184_v55 = vsel %vm689_vm6, %v1179_v52, 0 }
 0x673   : > { %v1028_v48 = vpack.c.bf16 %v1026_v47, %v1026_v47 }
 0x675   : > { %2352 = vmatmul.mubr.msk.bf16.vlgmr.msra.gmra.mrb[8].mxu1 %vm689_vm6, %v1028_v48  ;;  %v1177_v56 = vpop.permute.xlu1 %1176 }
 0x676   : > { %2362 = vmatpush3.bf16.xpose.msra.mxu1 %v1134_v49  ;;  %2363 = vmatprep.mubr.msk.bf16.mxu1 %vm2634_vm4, %v2633_v14 }
 0x677   : > { %2373 = vmatprep.subr.bf16.mxu1 %v2633_v14 }
 0x678   : > { %v2550_v50 = vpop.eup %2549 }
 0x679   : > { %v1027_v51 = vmul.f32 %v2550_v50, %v2546_v41 }
 0x67b   : > { %v1029_v53 = vpack.c.bf16 %v1027_v51, %v1027_v51 }
 0x67d   : > { %2358 = vmatmul.mubr.msk.bf16.vlgmr.msra.gmra.mrb[20].mxu0 %vm689_vm6, %v1029_v53  ;;  %2364 = vmatmul.mubr.msk.bf16.vlgmr.msra.gmra.mrb[12].mxu1 %vm689_vm6, %v1127_v54 }
 0x67e   : > { %2368 = vmatpush3.bf16.xpose.msra.mxu0 %v1184_v55  ;;  %2369 = vmatprep.mubr.msk.bf16.mxu0 %vm2634_vm4, %v2633_v14 }
 0x67f   : > { %2379 = vmatprep.subr.bf16.mxu0 %v2633_v14  ;;  %2375 = vmatprep.mubr.msk.bf16.mxu1 %vm2634_vm4, %v2633_v14 }
 0x685   : > { %2370 = vmatmul.mubr.msk.bf16.vlgmr.msra.gmra.mrb[24].mxu0 %vm689_vm6, %v1177_v56 }
 0x686   : > { %2381 = vmatprep.mubr.msk.bf16.mxu0 %vm2634_vm4, %v2633_v14 }
 0x748   : > { %v2899_v57 = vpop.f32.mrb[8].mxu1 }
 0x749   : > { %v2353_v58 = vpop.f32.mrb[9].mxu1 }
 0x74a   : > { %v1075_v59 = vpop.f32.mrb[10].mxu1 }
 0x74b   : > { %v2354_v60 = vpop.f32.mrb[11].mxu1 }
 0x750   : > { %v2901_v61 = vpop.f32.mrb[20].mxu0  ;;  %v1170_v62 = vpop.f32.mrb[12].mxu1 }
 0x751   : > { %v2506_v63 = vpack.i.bf16 %v2901_v61, %v2899_v57  ;;  %v2359_v0 = vpop.f32.mrb[21].mxu0  ;;  %v2365_v1 = vpop.f32.mrb[13].mxu1  ;;  %v1226_v2 = vsel %vm689_vm6, %v1170_v62, -inf }
 0x752   : > { %1227 = vmax.xlane.f32.xlu0 %v1226_v2  ;;  %v1123_v3 = vpop.f32.mrb[22].mxu0  ;;  %v1173_v4 = vpop.f32.mrb[14].mxu1 }
 0x753   : > { %v2360_v5 = vpop.f32.mrb[23].mxu0  ;;  %v2366_v7 = vpop.f32.mrb[15].mxu1 }
 0x758   : > { %v1220_v8 = vpop.f32.mrb[24].mxu0 }
 0x759   : > { %v2371_v9 = vpop.f32.mrb[25].mxu0  ;;  %v1229_v11 = vsel %vm689_vm6, %v1220_v8, -inf }
 0x75a   : > { %1230 = vmax.xlane.f32.xlu1 %v1229_v11  ;;  %v1223_v12 = vpop.f32.mrb[26].mxu0 }
 0x75b   : > { %v2372_v13 = vpop.f32.mrb[27].mxu0 }
 0x76b   : > { %1250 = vrot.lane.b32.xlu1 %v2817_v24, %s2642_s30 }
 0x76f   : > { %1348 = vrot.lane.b32.xlu1 %v2817_v24, %s2643_s20 }
 0x773   : > { %1398 = vrot.lane.b32.xlu1 %v2820_v27, %s2643_s20 }
 0x777   : > { %1396 = vrot.lane.b32.xlu1 %v2820_v27, %s2644_s15 }
 0x7df   : > { %v1228_v15 = vpop.xlane.xlu0 %1227 }
 0x7e0   : > { %v1232_v18 = vsub.f32 %v1170_v62, %v1228_v15 }
 0x7e2   : > { %v1234_v19 = vmul.f32 1.442695, %v1232_v18 }
 0x7e4   : > { %2551 = vpow2.f32 %v1234_v19 }
 0x7e7   : > { %v1231_v20 = vpop.xlane.xlu1 %1230 }
 0x7e8   : > { %v1233_v21 = vsub.f32 %v1220_v8, %v1231_v20 }
 0x7ea   : > { %v1236_v22 = vmul.f32 1.442695, %v1233_v21 }
 0x7eb   : > { %v1251_v23 = vpop.permute.xlu1 %1250 }
 0x7ec   : > { %2553 = vpow2.f32 %v1236_v22  ;;  %v1256_v25 = vsel %vm814_vm7, %v1251_v23, 0 }
 0x7ed   : > { %2374 = vmatpush3.bf16.msra.mxu1 %v1256_v25 }
 0x7ee   : > { %v2552_v26 = vpop.eup %2551  ;;  %2385 = vmatprep.subr.bf16.mxu1 %v2633_v14 }
 0x7ef   : > { %v1238_v28 = vsel %vm689_vm6, %v2552_v26, 0.0  ;;  %v1349_v36 = vpop.permute.xlu1 %1348 }
 0x7f0   : > { %1239 = vadd.xlane.f32.xlu0 %v1238_v28  ;;  %v1354_v39 = vsel %vm689_vm6, %v1349_v36, 0 }
 0x7f3   : > { %v1399_v42 = vpop.permute.xlu1 %1398 }
 0x7f4   : > { %v1404_v45 = vsel %vm689_vm6, %v1399_v42, 0 }
 0x7f6   : > { %v2554_v29 = vpop.eup %2553 }
 0x7f7   : > { %v1241_v30 = vsel %vm689_vm6, %v2554_v29, 0.0  ;;  %v1397_v46 = vpop.permute.xlu1 %1396 }
 0x7f8   : > { %1242 = vadd.xlane.f32.xlu0 %v1241_v30  ;;  %v2524_v30 = vld [vmem:[%s2757_s18 + $0x8] sm:$0xff]  }
 0x80e   : > { %1298 = vrot.lane.b32.xlu0 %v2820_v27, %s2642_s30 }
 0x812   : > { %1346 = vrot.lane.b32.xlu0 %v2817_v24, %s2644_s15 }
 0x87d   : > { %v1240_v31 = vpop.xlane.xlu0 %1239 }
 0x87e   : > { %2555 = vrcp.f32 %v1240_v31 }
 0x885   : > { %v1243_v32 = vpop.xlane.xlu0 %1242 }
 0x886   : > { %2557 = vrcp.f32 %v1243_v32 }
 0x888   : > { %v2556_v33 = vpop.eup %2555 }
 0x889   : > { %v1246_v34 = vmul.f32 %v2556_v33, %v2552_v26  ;;  %v1299_v35 = vpop.permute.xlu0 %1298 }
 0x88a   : > { %v1304_v37 = vsel %vm814_vm7, %v1299_v35, 0 }
 0x88b   : > { %2380 = vmatpush3.bf16.msra.mxu0 %v1304_v37  ;;  %v1248_v38 = vpack.c.bf16 %v1246_v34, %v1246_v34 }
 0x88c   : > { %2391 = vmatprep.subr.bf16.mxu0 %v2633_v14 }
 0x88d   : > { %2376 = vmatmul.mubr.msk.bf16.vlgmr.msra.gmra.mrb[16].mxu1 %vm689_vm6, %v1248_v38  ;;  %v1347_v44 = vpop.permute.xlu0 %1346 }
 0x88e   : > { %2386 = vmatpush3.bf16.xpose.msra.mxu1 %v1354_v39  ;;  %2387 = vmatprep.mubr.msk.bf16.mxu1 %vm2634_vm4, %v2633_v14 }
 0x88f   : > { %2397 = vmatprep.subr.bf16.mxu1 %v2633_v14 }
 0x890   : > { %v2558_v40 = vpop.eup %2557 }
 0x891   : > { %v1247_v41 = vmul.f32 %v2558_v40, %v2554_v29  ;;  %v2523_v29 = vld [vmem:[%s2757_s18] sm:$0xff]  }
 0x893   : > { %v1249_v43 = vpack.c.bf16 %v1247_v41, %v1247_v41 }
 0x895   : > { %2382 = vmatmul.mubr.msk.bf16.vlgmr.msra.gmra.mrb[28].mxu0 %vm689_vm6, %v1249_v43  ;;  %2388 = vmatmul.mubr.msk.bf16.vlgmr.msra.gmra.mrb[20].mxu1 %vm689_vm6, %v1347_v44 }
 0x896   : > { %2392 = vmatpush3.bf16.xpose.msra.mxu0 %v1404_v45  ;;  %2393 = vmatprep.mubr.msk.bf16.mxu0 %vm2634_vm4, %v2633_v14 }
 0x897   : > { %2403 = vmatprep.subr.bf16.mxu0 %v2633_v14  ;;  %2399 = vmatprep.mubr.msk.bf16.mxu1 %vm2634_vm4, %v2633_v14 }
 0x89d   : > { %2394 = vmatmul.mubr.msk.bf16.vlgmr.msra.gmra.mrb[32].mxu0 %vm689_vm6, %v1397_v46 }
 0x89e   : > { %2405 = vmatprep.mubr.msk.bf16.mxu0 %vm2634_vm4, %v2633_v14 }
 0x960   : > { %v1292_v47 = vpop.f32.mrb[16].mxu1 }
 0x961   : > { %v2377_v48 = vpop.f32.mrb[17].mxu1 }
 0x962   : > { %v1295_v49 = vpop.f32.mrb[18].mxu1 }
 0x963   : > { %v2378_v50 = vpop.f32.mrb[19].mxu1 }
 0x968   : > { %v1340_v51 = vpop.f32.mrb[28].mxu0  ;;  %v1390_v52 = vpop.f32.mrb[20].mxu1 }
 0x969   : > { %v2511_v53 = vpack.i.bf16 %v1340_v51, %v1292_v47  ;;  %v2383_v54 = vpop.f32.mrb[29].mxu0  ;;  %v2389_v55 = vpop.f32.mrb[21].mxu1  ;;  %v1446_v56 = vsel %vm689_vm6, %v1390_v52, -inf }
 0x96a   : > { %1447 = vmax.xlane.f32.xlu0 %v1446_v56  ;;  %v1343_v58 = vpop.f32.mrb[30].mxu0  ;;  %v1393_v59 = vpop.f32.mrb[22].mxu1  ;;  %v1604_v56 = vlaneseq }
 0x96b   : > { %v2384_v60 = vpop.f32.mrb[31].mxu0  ;;  %v2390_v62 = vpop.f32.mrb[23].mxu1  ;;  %v2970_v59 = vld [vmem:[%s2778_s17] sm:$0x3f] }
 0x96c   : > { %v2966_v58 = vshrl.u32 %v1604_v56, 7 }
 0x970   : > { %v1440_v0 = vpop.f32.mrb[32].mxu0 }
 0x971   : > { %v2395_v1 = vpop.f32.mrb[33].mxu0  ;;  %v1449_v2 = vsel %vm689_vm6, %v1440_v0, -inf }
 0x972   : > { %1450 = vmax.xlane.f32.xlu1 %v1449_v2  ;;  %v1443_v3 = vpop.f32.mrb[34].mxu0 }
 0x973   : > { %v2396_v4 = vpop.f32.mrb[35].mxu0 }
 0x983   : > { %1470 = vrot.lane.b32.xlu1 %v2817_v24, %s2645_s29 }
 0x987   : > { %2507 = vrot.lane.b32.xlu1 %v2506_v63, %s2646_s13 }
 0x98b   : > { %2512 = vrot.lane.b32.xlu1 %v2511_v53, %s2647_s16 }
 0x9f7   : > { %v1448_v5 = vpop.xlane.xlu0 %1447 }
 0x9f8   : > { %v1452_v7 = vsub.f32 %v1390_v52, %v1448_v5 }
 0x9fa   : > { %v1454_v8 = vmul.f32 1.442695, %v1452_v7 }
 0x9fc   : > { %2559 = vpow2.f32 %v1454_v8 }
 0x9ff   : > { %v1451_v9 = vpop.xlane.xlu1 %1450 }
 0xa00   : > { %v1453_v11 = vsub.f32 %v1440_v0, %v1451_v9 }
 0xa02   : > { %v1456_v12 = vmul.f32 1.442695, %v1453_v11 }
 0xa03   : > { %v1471_v13 = vpop.permute.xlu1 %1470 }
 0xa04   : > { %2561 = vpow2.f32 %v1456_v12  ;;  %v1476_v15 = vsel %vm814_vm7, %v1471_v13, 0 }
 0xa05   : > { %2398 = vmatpush3.bf16.msra.mxu1 %v1476_v15 }
 0xa06   : > { %v2560_v24 = vpop.eup %2559  ;;  %2409 = vmatprep.subr.bf16.mxu1 %v2633_v14 }
 0xa07   : > { %v1458_v57 = vsel %vm689_vm6, %v2560_v24, 0.0  ;;  %v2508_v40 = vpop.permute.xlu1 %2507 }
 0xa08   : > { %1459 = vadd.xlane.f32.xlu0 %v1458_v57  ;;  %v2510_v42 = vunpack.i.h.bf16 %v2508_v40  ;;  %v2509_v43 = vunpack.i.l.bf16 %v2508_v40 }
 0xa0a   : > { %v1591_v47 = vsel %vm689_vm6, %v2867_v10, %v2510_v42  ;;  %v1590_v48 = vsel %vm689_vm6, %v2865_v6, %v2509_v43  ;;  %v1606_v10 = vsub.s32 0, %v2966_v58 }
 0xa0b   : > { %v2513_v41 = vpop.permute.xlu1 %2512 }
 0xa0c   : > { %v2515_v44 = vunpack.i.h.bf16 %v2513_v41  ;;  %v2514_v45 = vunpack.i.l.bf16 %v2513_v41  ;;  %v1607_v6 = vrot.slane %v2970_v59, %v1606_v10  ;;  %v1794_v10 = vsub.s32 3, %v2966_v58 }
 0xa0e   : > { %v2562_v61 = vpop.eup %2561  ;;  %v1593_v51 = vsel %vm1592_vm8, %v1590_v48, %v2514_v45  ;;  %v1594_v52 = vsel %vm1592_vm8, %v1591_v47, %v2515_v44  ;;  %v2533_v45 = vld [vmem:[%s2773_s14 + $0x30] sm:$0xff]   ;;  %v2219_v47 = vld [vmem:[%s534_s28] ss:$0 sm:$0xff] }
 0xa0f   : > { %v1461_v63 = vsel %vm689_vm6, %v2562_v61, 0.0 }
 0xa10   : > { %1462 = vadd.xlane.f32.xlu0 %v1461_v63  ;;  %v2525_v63 = vld [vmem:[%s2762_s24] sm:$0xff]  }
 0xa26   : > { %1518 = vrot.lane.b32.xlu0 %v2820_v27, %s2645_s29 }
 0xa95   : > { %v1460_v18 = vpop.xlane.xlu0 %1459 }
 0xa96   : > { %2563 = vrcp.f32 %v1460_v18  ;;  %v2526_v18 = vld [vmem:[%s2762_s24 + $0x8] sm:$0xff]  }
 0xa9d   : > { %v1463_v19 = vpop.xlane.xlu0 %1462 }
 0xa9e   : > { %2565 = vrcp.f32 %v1463_v19  ;;  %v2527_v19 = vld [vmem:[%s2773_s14] sm:$0xff]  }
 0xaa0   : > { %v2564_v20 = vpop.eup %2563 }
 0xaa1   : > { %v1466_v21 = vmul.f32 %v2564_v20, %v2560_v24  ;;  %v1519_v22 = vpop.permute.xlu0 %1518  ;;  %v2528_v20 = vld [vmem:[%s2773_s14 + $0x8] sm:$0xff]  }
 0xaa2   : > { %v1524_v23 = vsel %vm814_vm7, %v1519_v22, 0  ;;  %v2530_v22 = vld [vmem:[%s2773_s14 + $0x18] sm:$0xff]  }
 0xaa3   : > { %2404 = vmatpush3.bf16.msra.mxu0 %v1524_v23  ;;  %v1468_v25 = vpack.c.bf16 %v1466_v21, %v1466_v21  ;;  %v2529_v21 = vld [vmem:[%s2773_s14 + $0x10] sm:$0xff]   ;;  %v2531_v23 = vld [vmem:[%s2773_s14 + $0x20] sm:$0xff]  }
 0xaa4   : > { %2417 = vmatprep.subr.bf16.mxu0 %v2633_v14 }
 0xaa5   : > { %2400 = vmatmul.mubr.msk.bf16.vlgmr.msra.gmra.mrb[24].mxu1 %vm689_vm6, %v1468_v25  ;;  %v2532_v25 = vld [vmem:[%s2773_s14 + $0x28] sm:$0xff]  }
 0xaa6   : > { %2413 = vmatprep.mubr.msk.bf16.mxu1 %vm2634_vm4, %v2633_v14  ;;  %2410 = vmatpush3.bf16.msra.mxu1 %v2523_v29 }
 0xaa7   : > { %2411 = vmatprep.subr.bf16.mxu1 %v2633_v14 }
 0xaa8   : > { %v2566_v27 = vpop.eup %2565 }
 0xaa9   : > { %v1467_v26 = vmul.f32 %v2566_v27, %v2562_v61 }
 0xaaa   : > { %2412 = vmatpush3.bf16.msra.mxu1 %v2524_v30 }
 0xaab   : > { %v1469_v28 = vpack.c.bf16 %v1467_v26, %v1467_v26  ;;  %2425 = vmatprep.subr.bf16.mxu1 %v2633_v14 }
 0xaad   : > { %2406 = vmatmul.mubr.msk.bf16.vlgmr.msra.gmra.mrb[36].mxu0 %vm689_vm6, %v1469_v28 }
 0xaae   : > { %2421 = vmatprep.mubr.msk.bf16.mxu0 %vm2634_vm4, %v2633_v14  ;;  %2418 = vmatpush3.bf16.msra.mxu0 %v2525_v63 }
 0xaaf   : > { %2419 = vmatprep.subr.bf16.mxu0 %v2633_v14 }
 0xab2   : > { %2420 = vmatpush3.bf16.msra.mxu0 %v2526_v18 }
 0xb78   : > { %v1512_v31 = vpop.f32.mrb[24].mxu1 }
 0xb79   : > { %v2401_v32 = vpop.f32.mrb[25].mxu1 }
 0xb7a   : > { %v1515_v33 = vpop.f32.mrb[26].mxu1  ;;  %v1695_v32 = vsub.s32 1, %v2966_v58 }
 0xb7b   : > { %v2402_v34 = vpop.f32.mrb[27].mxu1 }
 0xb7c   : > { %v1696_v33 = vrot.slane %v2970_v59, %v1695_v32  ;;  %v1701_v34 = vsub.s32 2, %v2966_v58 }
 0xb7e   : > { %v1702_v40 = vrot.slane %v2970_v59, %v1701_v34 }
 0xb80   : > { %v1560_v35 = vpop.f32.mrb[36].mxu0 }
 0xb81   : > { %v2516_v36 = vpack.i.bf16 %v1560_v35, %v1512_v31  ;;  %v2407_v37 = vpop.f32.mrb[37].mxu0 }
 0xb82   : > { %v1563_v38 = vpop.f32.mrb[38].mxu0 }
 0xb83   : > { %2517 = vrot.lane.b32.xlu0 %v2516_v36, %s2648_s27  ;;  %v2408_v39 = vpop.f32.mrb[39].mxu0 }
 0xbf5   : > { %v2518_v46 = vpop.permute.xlu0 %2517 }
 0xbf6   : > { %v2520_v49 = vunpack.i.h.bf16 %v2518_v46  ;;  %v2519_v50 = vunpack.i.l.bf16 %v2518_v46  ;;  %v2534_v46 = vld [vmem:[%s2773_s14 + $0x38] sm:$0xff]  }
 0xbf8   : > { %v1597_v53 = vsel %vm1595_vm9, %v1594_v52, %v2520_v49  ;;  %v1596_v54 = vsel %vm1595_vm9, %v1593_v51, %v2519_v50 }
 0xbf9   : > { %v1598_v55 = vpack.c.bf16 %v1597_v53, %v1596_v54 }
 0xbfb   : > { %2414 = vmatmul.mubr.msk.bf16.vlgmr.msra.gmra.mrb[28].mxu1 %vm639_vm5, %v1598_v55 }
 0xbfc   : > { %2441 = vmatprep.mubr.msk.bf16.mxu1 %vm2634_vm4, %v2633_v14  ;;  %2426 = vmatpush3.bf16.msra.mxu1 %v2527_v19 }
 0xbfd   : > { %2427 = vmatprep.subr.bf16.mxu1 %v2633_v14 }
 0xc00   : > { %2428 = vmatpush3.bf16.msra.mxu1 %v2528_v20 }
 0xc01   : > { %2429 = vmatprep.subr.bf16.mxu1 %v2633_v14 }
 0xc04   : > { %2430 = vmatpush3.bf16.msra.mxu1 %v2529_v21 }
 0xc05   : > { %2431 = vmatprep.subr.bf16.mxu1 %v2633_v14 }
 0xc08   : > { %2432 = vmatpush3.bf16.msra.mxu1 %v2530_v22  ;;  %v1915_v22 = vsub.s32 4, %v2966_v58 }
 0xc09   : > { %2433 = vmatprep.subr.bf16.mxu1 %v2633_v14 }
 0xc0c   : > { %2434 = vmatpush3.bf16.msra.mxu1 %v2531_v23  ;;  %v1921_v23 = vsub.s32 5, %v2966_v58 }
 0xc0d   : > { %2435 = vmatprep.subr.bf16.mxu1 %v2633_v14 }
 0xc10   : > { %2436 = vmatpush3.bf16.msra.mxu1 %v2532_v25  ;;  %v1916_v25 = vrot.slane %v2970_v59, %v1915_v22 }
 0xc11   : > { %2437 = vmatprep.subr.bf16.mxu1 %v2633_v14 }
 0xc14   : > { %2438 = vmatpush3.bf16.msra.mxu1 %v2533_v45  ;;  %v2651_v45 = vmov (!%p2231_p6), 1966171168  }
 0xc15   : > { %2439 = vmatprep.subr.bf16.mxu1 %v2633_v14  ;;  %v1795_v14 = vrot.slane %v2970_v59, %v1794_v10 }
 0xc18   : > { %2440 = vmatpush3.bf16.msra.mxu1 %v2534_v46  ;;  %v2010_v46 = vunpack.c.l.s4 (!%p2231_p6), %v2651_v45 }
 0xcce   : > { %v1657_v60 = vpop.f32.mrb[28].mxu1 }
 0xccf   : > { %v1658_v62 = vadd.f32 %v1657_v60, %v1607_v6  ;;  %v2415_v0 = vpop.f32.mrb[29].mxu1 }
 0xcd0   : > { %v1660_v1 = vpop.f32.mrb[30].mxu1 }
 0xcd1   : > { %v1661_v2 = vadd.f32 %v1660_v1, %v1607_v6  ;;  %v2416_v3 = vpop.f32.mrb[31].mxu1  ;;  %v1664_v4 = vadd.f32 %v1658_v62, %v2799_v16 }
 0xcd3   : > { %v1666_v5 = vsel %vm639_vm5, %v1664_v4, 0.0  ;;  %v1665_v7 = vadd.f32 %v1661_v2, %v2801_v17 }
 0xcd4   : > { %1667 = vadd.xlane.f32.xlu1 %v1666_v5 }
 0xcd5   : > { %v1669_v8 = vsel %vm639_vm5, %v1665_v7, 0.0 }
 0xcd6   : > { %1670 = vadd.xlane.f32.xlu0 %v1669_v8 }
 0xd61   : > { %v1668_v9 = vpop.xlane.xlu1 %1667 }
 0xd62   : > { %v1673_v11 = vmul.f32 0.03125, %v1668_v9 }
 0xd63   : > { %v1671_v12 = vpop.xlane.xlu0 %1670 }
 0xd64   : > { %v1675_v13 = vsub.f32 %v1664_v4, %v1673_v11  ;;  %v1674_v15 = vmul.f32 0.03125, %v1671_v12 }
 0xd66   : > { %v1676_v24 = vsub.f32 %v1665_v7, %v1674_v15  ;;  %v1677_v57 = vmul.f32 %v1675_v13, %v1675_v13 }
 0xd68   : > { %v1679_v16 = vsel %vm639_vm5, %v1677_v57, 0.0  ;;  %v1678_v61 = vmul.f32 %v1676_v24, %v1676_v24 }
 0xd69   : > { %1680 = vadd.xlane.f32.xlu0 %v1679_v16 }
 0xd6a   : > { %v1682_v17 = vsel %vm639_vm5, %v1678_v61, 0.0 }
 0xd6b   : > { %1683 = vadd.xlane.f32.xlu1 %v1682_v17 }
 0xdf6   : > { %v1681_v27 = vpop.xlane.xlu0 %1680 }
 0xdf7   : > { %v1685_v26 = vmul.f32 0.03125, %v1681_v27 }
 0xdf8   : > { %v1684_v28 = vpop.xlane.xlu1 %1683 }
 0xdf9   : > { %v1687_v29 = vadd.f32 1e-05, %v1685_v26  ;;  %v1686_v30 = vmul.f32 0.03125, %v1684_v28  ;;  %v1922_v26 = vrot.slane %v2970_v59, %v1921_v23 }
 0xdfb   : > { %2567 = vrsqrt.f32 %v1687_v29  ;;  %v1688_v31 = vadd.f32 1e-05, %v1686_v30 }
 0xdfd   : > { %2569 = vrsqrt.f32 %v1688_v31 }
 0xe05   : > { %v2568_v35 = vpop.eup %2567 }
 0xe06   : > { %v1691_v36 = vmul.f32 %v2568_v35, %v1675_v13  ;;  %v2575_v35 = vld [vmem:[%s3080_s10] sm:$0xff] (!%p2231_p6)  }
 0xe07   : > { %v2570_v37 = vpop.eup %2569 }
 0xe08   : > { %v1697_v38 = vmul.f32 %v1696_v33, %v1691_v36  ;;  %v1692_v39 = vmul.f32 %v2570_v37, %v1676_v24  ;;  %v2649_v37 = vmov (!%p2231_p6), 0.0  }
 0xe09   : > { %2445 = vmatprep.subr.bf16.mxu0 (!%p2231_p6), %v2649_v37 }
 0xe0a   : > { %v1698_v41 = vmul.f32 %v1696_v33, %v1692_v39  ;;  %v1703_v42 = vadd.f32 %v1702_v40, %v1697_v38  ;;  %v2576_v38 = vld [vmem:[%s3080_s10 + $0x8] sm:$0xff] (!%p2231_p6)  }
 0xe0c   : > { %v1704_v43 = vadd.f32 %v1702_v40, %v1698_v41 }
 0xe0e   : > { %v1705_v44 = vpack.c.bf16 %v1704_v43, %v1703_v42 }
 0xe10   : > { %2422 = vmatmul.mubr.msk.bf16.vlgmr.msra.gmra.mrb[40].mxu0 %vm639_vm5, %v1705_v44 }
 0xe11   : > { %2446 = vmatpush3.bf16.msra.mxu0 (!%p2231_p6), %v2575_v35  ;;  %2449 = vmatprep.mubr.msk.bf16.mxu0 (!%p2231_p6), %vm2650_vm10, %v2649_v37 }
 0xe12   : > { %2447 = vmatprep.subr.bf16.mxu0 (!%p2231_p6), %v2649_v37 }
 0xe15   : > { %2448 = vmatpush3.bf16.msra.mxu0 (!%p2231_p6), %v2576_v38 }
 0xee3   : > { %v1766_v48 = vpop.f32.mrb[40].mxu0 }
 0xee4   : > { %v1767_v49 = vadd.f32 %v2219_v47, %v1766_v48  ;;  %v2423_v50 = vpop.f32.mrb[41].mxu0  ;;  %v2232_v48 = vld [vmem:[%s3081_s11] ss:$0 sm:$0xff] (!%p2231_p6) }
 0xee5   : > { %v1769_v51 = vpop.f32.mrb[42].mxu0 }
 0xee6   : > { %v1770_v52 = vadd.f32 %v2219_v47, %v1769_v51  ;;  %v2424_v53 = vpop.f32.mrb[43].mxu0  ;;  %v1773_v54 = vmax.f32 %v1767_v49, 0.0  ;;  %v2011_v47 = vunpack.c.0.s8 (!%p2231_p6), %v2010_v46 }
 0xee8   : > { %v1774_v55 = vmax.f32 %v1770_v52, 0.0  ;;  %v2014_v49 = vsub.s32 (!%p2231_p6), %v2011_v47, %v2966_v58 }
 0xeea   : > { %v1775_v56 = vpack.c.bf16 %v1774_v55, %v1773_v54 }
 0xeec   : > { %2442 = vmatmul.mubr.bf16.vlgmr.msra.gmra.mrb[32].mxu1 %v1775_v56 }
 0xfbf   : > { %v1878_v6 = vpop.f32.mrb[32].mxu1 }
 0xfc0   : > { %v1879_v60 = vadd.f32 %v1878_v6, %v1795_v14  ;;  %v2443_v62 = vpop.f32.mrb[33].mxu1 }
 0xfc1   : > { %v1881_v0 = vpop.f32.mrb[34].mxu1 }
 0xfc2   : > { %v1882_v1 = vadd.f32 %v1881_v0, %v1795_v14  ;;  %v2444_v2 = vpop.f32.mrb[35].mxu1  ;;  %v1885_v3 = vadd.f32 %v1879_v60, %v1703_v42 }
 0xfc4   : > { %v1887_v4 = vsel %vm639_vm5, %v1885_v3, 0.0  ;;  %v1886_v5 = vadd.f32 %v1882_v1, %v1704_v43 }
 0xfc5   : > { %1888 = vadd.xlane.f32.xlu0 %v1887_v4 }
 0xfc6   : > { %v1890_v7 = vsel %vm639_vm5, %v1886_v5, 0.0 }
 0xfc7   : > { %1891 = vadd.xlane.f32.xlu1 %v1890_v7 }
0x1052   : > { %v1889_v8 = vpop.xlane.xlu0 %1888 }
0x1053   : > { %v1893_v9 = vmul.f32 0.03125, %v1889_v8 }
0x1054   : > { %v1892_v11 = vpop.xlane.xlu1 %1891 }
0x1055   : > { %v1895_v12 = vsub.f32 %v1885_v3, %v1893_v9  ;;  %v1894_v13 = vmul.f32 0.03125, %v1892_v11 }
0x1057   : > { %v1896_v15 = vsub.f32 %v1886_v5, %v1894_v13  ;;  %v1897_v24 = vmul.f32 %v1895_v12, %v1895_v12 }
0x1059   : > { %v1899_v57 = vsel %vm639_vm5, %v1897_v24, 0.0  ;;  %v1898_v16 = vmul.f32 %v1896_v15, %v1896_v15 }
0x105a   : > { %1900 = vadd.xlane.f32.xlu0 %v1899_v57 }
0x105b   : > { %v1902_v61 = vsel %vm639_vm5, %v1898_v16, 0.0 }
0x105c   : > { %1903 = vadd.xlane.f32.xlu1 %v1902_v61 }
0x10e7   : > { %v1901_v17 = vpop.xlane.xlu0 %1900 }
0x10e8   : > { %v1905_v63 = vmul.f32 0.03125, %v1901_v17 }
0x10e9   : > { %v1904_v18 = vpop.xlane.xlu1 %1903 }
0x10ea   : > { %v1907_v19 = vadd.f32 1e-05, %v1905_v63  ;;  %v1906_v20 = vmul.f32 0.03125, %v1904_v18 }
0x10ec   : > { %2571 = vrsqrt.f32 %v1907_v19  ;;  %v1908_v21 = vadd.f32 1e-05, %v1906_v20 }
0x10ee   : > { %2573 = vrsqrt.f32 %v1908_v21 }
0x10f6   : > { %v2572_v27 = vpop.eup %2571 }
0x10f7   : > { %v1911_v28 = vmul.f32 %v2572_v27, %v1895_v12 }
0x10f8   : > { %v2574_v29 = vpop.eup %2573 }
0x10f9   : > { %v1917_v30 = vmul.f32 %v1916_v25, %v1911_v28  ;;  %v1912_v31 = vmul.f32 %v2574_v29, %v1896_v15  ;;  %1930 = sbr.rel (%p2231_p6) target bundleno = 4581 (0x11e5), region = 76 }
0x10fb   : > { %v1923_v32 = vadd.f32 %v1922_v26, %v1917_v30  ;;  %v1918_v33 = vmul.f32 %v1916_v25, %v1912_v31 }
0x10fd   : > { %1925 = vst.msk [vmem:[#allocation2] sm:$0xff] %vm639_vm5, %v1923_v32  ;;  %v1924_v34 = vadd.f32 %v1922_v26, %v1918_v33  ;;  %v1931_v36 = vpack.c.bf16 (!%p2231_p6), %v1923_v32, %v1923_v32 }
0x10ff   : > { %1926 = vst.msk [vmem:[#allocation2 + $0x8] sm:$0xff] %vm639_vm5, %v1924_v34  ;;  %v1932_v59 = vpack.c.bf16 (!%p2231_p6), %v1924_v34, %v1924_v34  ;;  %v1946_v39 = vunpack.c.l.b16 (!%p2231_p6), %v1931_v36 }
0x1101   : > { %v1947_v40 = vunpack.c.l.b16 %v1932_v59  ;;  %v1948_v41 = vrot.slane %v1946_v39, 7 }
0x1103   : > { %v1949_v42 = vrot.slane %v1947_v40, 6 }
0x1105   : > { %v1951_v43 = vsel %vm1950_vm11, %v1949_v42, %v1948_v41 }
0x1106   : > { %v1952_v44 = vpack.c.b16 %v1951_v43, %v1951_v43 }
0x1108   : > { %2450 = vmatmul.mubr.msk.bf16.vlgmr.msra.gmra.mrb[0].mxu0 %vm639_vm5, %v1952_v44 }
0x11db   : > { %v2002_v50 = vpop.f32.mrb[0].mxu0 }
0x11dc   : > { %v2003_v51 = vadd.f32 %v2232_v48, %v2002_v50  ;;  %v2451_v52 = vpop.f32.mrb[1].mxu0 }
0x11dd   : > { %v2005_v53 = vpop.f32.mrb[2].mxu0 }
0x11de   : > { %v2015_v54 = vrot.slane %v2003_v51, %v2014_v49  ;;  %v2452_v55 = vpop.f32.mrb[3].mxu0 }
0x11e0   : > { %v2016_v56 = vcombine.high %v2015_v54, %v2015_v54  ;;  %v2023_v10 = vrot.slane %v2015_v54, %v2014_v49 }
0x11e2   : > { %v2030_v14 = vrot.slane %v2016_v56, %v2014_v49  ;;  %2034 = vst.msk [vmem:[#allocation3] sm:$0x1] %vm2033_vm12, %v2023_v10 }
0x11e4   : > { %2035 = vst.msk [vmem:[#allocation3 + $0x1] sm:$0x1] %vm2033_vm12, %v2030_v14 }
0x11e5 PF: > { %s3091_s22 = sadd.s32 4294967295, %s2629_s23   ;;  %s2652_s3 = smov [#allocation3]  }
0x11e6   : > { %p3033_p7 = scmp.eq.s32.totalorder %s3091_s22, 1  ;;  %s2045_s12 = sshll.u32 %s2652_s3, 4  ;;  %s2046_s12 = int_to_ptr.vmem [resolvable:$true] %s2045_s12 }
0x11e7   : > { %s2577_s30 = scalar_lea.vmem %s2046_s12, 32  ;;  %p2584_p11 = scmp.lt.s32.totalorder %s2046_s12, %s2046_s12 }
0x11e8   : > { %p2578_p8 = scmp.ne.s32.totalorder %s2046_s12, %s2577_s30  ;;  %p2585_p12 = scmp.lt.s32.totalorder %s2577_s30, %s2577_s30 }
0x11ea   : > { %p2579_p9 = pnand %p2578_p8, %p3033_p7  ;;  %p2586_p13 = por %p2585_p12, %p2584_p11 }
0x11ec   : > { %p2580_p10 = pneg %p2579_p9 }
0x11ee   : > { %p2587_p0 = pnand %p2586_p13, %p2580_p10 }
0x11f0   : > { %2590 = shalt.err (!%p2587_p0)
}
0x11f1   : > { %s3093_s29 = sld [smem:[#allocation9_spill]] }
0x11f7   : > { %s2591_s13 = scalar_lea.hbm %s3093_s29, 32 }
0x11f8   : > { %p2592_p1 = scmp.ne.s32.totalorder %s3093_s29, %s2591_s13  ;;  %p2597_p4 = scmp.lt.u32.totalorder %s2591_s13, %s3093_s29 }
0x11fa   : > { %p2593_p2 = pnand %p2592_p1, %p3033_p7 }
0x11fc   : > { %p2594_p3 = pneg %p2593_p2 }
0x11fe   : > { %p2599_p5 = pnand %p2597_p4, %p2594_p3 }
0x1200   : > { %2602 = shalt.err (!%p2599_p5)
}
0x1201   : > { %s2653_s28 = smov 1  }
0x1202   : > { %2454 = dma.vmem_to_hbm [thread:$0]  (%p3033_p7), %s2046_s12, 32, %s3093_s29, [#allocation4], %s2647_s16, %s2647_s16, %s2653_s28  }
0x1203   : > { %2616 = dma.done.wait (%p3033_p7), [#allocation4], 32  }
0x1204   : > { %2618 = vsyncadd (%p3033_p7), [#allocation4], 4294967264 }
0x1205 PF: > { %s23_s23 = sadd.s32 1, %s2629_s23   ;;  %s3094_s21 = sld [smem:[#allocation6_spill]] }
0x1206   : > { %p20_p6 = scmp.ge.s32.totalorder %s23_s23, 4   ;;  %s3095_s22 = sld [smem:[#allocation7_spill]] }
0x1208   :  { %22 = sbr.rel (!%p20_p6) target bundleno = 5 (0x5), region = 125 }
0x120f   :  { %2061 = vsyncpa [#allocation4], 1 }
0x1210   :  { %2063 = vsyncpa [#allocation4 + $0x1], 1 }

</bundles_post_ra>
